<compile_context>
chip_gen: v7x
topology: tpu7x:2x2x1
jax: 0.10.0
libtpu: 0.0.40
codegen_flags: <defaults>
</compile_context>

<pallas_src>
import jax
import jax.numpy as jnp
from jax.experimental import pallas as pl
from jax.experimental.pallas import tpu as pltpu


def _round_up(x, m):
    return (x + m - 1) // m * m


# ---------- fused DRconv2 + 2x DRconv1_L + channel concat (1x1 convs) -------

def _fused_dr_kernel(xe_ref, i0_ref, i2_ref, w2_ref, w1a_ref, w1b_ref, b_ref,
                     o_ref):
    # xe: (tile_m, C_enc) bf16, i0/i2: (tile_m, C_vit) bf16,
    # weights zero-padded to (Cin, C_cat) so each matmul writes its own
    # disjoint lane range of the concatenated output; f32 accumulation.
    acc = jnp.dot(xe_ref[...], w2_ref[...], preferred_element_type=jnp.float32)
    acc = acc + jnp.dot(i0_ref[...], w1a_ref[...],
                        preferred_element_type=jnp.float32)
    acc = acc + jnp.dot(i2_ref[...], w1b_ref[...],
                        preferred_element_type=jnp.float32)
    o_ref[...] = (acc + b_ref[...]).astype(o_ref.dtype)


def fused_dr_concat(x_enc, interm0, interm2, params, *, tile_m=1024):
    """torch.cat([DRconv2(x), DRconv1_L(i0), DRconv1_L(i2)], dim=1), channels-last.

    x_enc: (B, C_enc, H, W) NCHW; interm0/2: (B, H, W, C_vit) NHWC.
    Returns x_cat channels-last (B, H, W, C_cat) in bf16.
    """
    B, C_enc, H, W = x_enc.shape
    C_vit = interm0.shape[-1]
    C_dr1 = params['W_dr1'].shape[0]
    C_dr2 = params['W_dr2'].shape[0]
    C_cat = C_dr2 + 2 * C_dr1            # real model: 128 + 64 + 64 = 256 (lane-aligned)
    M = B * H * W
    tile_m = min(tile_m, _round_up(M, 8))
    Mp = _round_up(M, tile_m)

    # pixels-major, bf16 (cast fuses with the layout change in XLA)
    xe = jnp.transpose(x_enc, (0, 2, 3, 1)).reshape(M, C_enc).astype(jnp.bfloat16)
    i0 = interm0.reshape(M, C_vit).astype(jnp.bfloat16)
    i2 = interm2.reshape(M, C_vit).astype(jnp.bfloat16)
    if Mp != M:
        pad = ((0, Mp - M), (0, 0))
        xe = jnp.pad(xe, pad)
        i0 = jnp.pad(i0, pad)
        i2 = jnp.pad(i2, pad)

    # concat folded into the matmul via zero-padded weight columns
    w2 = jnp.pad(params['W_dr2'].T, ((0, 0), (0, C_cat - C_dr2))).astype(jnp.bfloat16)
    w1a = jnp.pad(params['W_dr1'].T, ((0, 0), (C_dr2, C_dr1))).astype(jnp.bfloat16)
    w1b = jnp.pad(params['W_dr1'].T, ((0, 0), (C_dr2 + C_dr1, 0))).astype(jnp.bfloat16)
    b = jnp.concatenate([params['b_dr2'], params['b_dr1'], params['b_dr1']]
                        ).reshape(1, C_cat).astype(jnp.float32)

    out = pl.pallas_call(
        _fused_dr_kernel,
        out_shape=jax.ShapeDtypeStruct((Mp, C_cat), jnp.bfloat16),
        grid=(Mp // tile_m,),
        in_specs=[pl.BlockSpec((tile_m, C_enc), lambda i: (i, 0)),
                  pl.BlockSpec((tile_m, C_vit), lambda i: (i, 0)),
                  pl.BlockSpec((tile_m, C_vit), lambda i: (i, 0)),
                  pl.BlockSpec((C_enc, C_cat), lambda i: (0, 0)),
                  pl.BlockSpec((C_vit, C_cat), lambda i: (0, 0)),
                  pl.BlockSpec((C_vit, C_cat), lambda i: (0, 0)),
                  pl.BlockSpec((1, C_cat), lambda i: (0, 0))],
        out_specs=pl.BlockSpec((tile_m, C_cat), lambda i: (i, 0)),
        compiler_params=pltpu.CompilerParams(
            dimension_semantics=("parallel",)),
    )(xe, i0, i2, w2, w1a, w1b, b)
    return out[:M].reshape(B, H, W, C_cat)


# -------------- masked average pooling (fg+bg) via bilinear adjoint ---------

def _bilinear_adjoint(masks_hi, src_hw):
    """Adjoint of bilinear upsampling (H,W)->(Hm,Wm), applied to each mask.

    Bilinear resize U is linear, so sum_p m(p) * (U f)(p) == sum_q (U^T m)(q) * f(q):
    masked average pooling can run on the native-resolution features without ever
    materialising the upsampled feature map (exact, not an approximation).
    """
    H, W = src_hw
    Hm, Wm = masks_hi.shape[-2:]
    up = lambda z: jax.image.resize(z, (Hm, Wm), method='bilinear',
                                    antialias=False)
    adj = jax.linear_transpose(up, jnp.zeros((H, W), jnp.float32))
    return jax.vmap(lambda m: adj(m)[0])(masks_hi.astype(jnp.float32))


def _pool_num_kernel(m_ref, f_ref, o_ref, acc):
    # m: (2S, tile_hw) bf16, f: (tile_hw, c_blk) bf16; HW is the reduction axis.
    k = pl.program_id(1)

    @pl.when(k == 0)
    def _():
        acc[...] = jnp.zeros_like(acc)

    acc[...] += jnp.dot(m_ref[...], f_ref[...],
                        preferred_element_type=jnp.float32)

    @pl.when(k == pl.num_programs(1) - 1)
    def _():
        o_ref[...] = acc[...]


def masked_pool_numerator(fts_px, masks, *, tile_hw=2048, c_blk=128):
    """sum_q masks[s,q] * fts[q,c] -> (S2, C) f32.

    fts_px: (HW, C) bf16 pixels-major features at native resolution.
    masks:  (S2, HW) bf16 (adjoint-downsampled fg/bg masks).
    Grid = (channel blocks [parallel, feeds v7x's 2nd core], HW blocks [arbitrary]).
    """
    HW, C = fts_px.shape
    S2 = masks.shape[0]
    c_blk = c_blk if (C % c_blk == 0) else C
    tile = min(tile_hw, _round_up(HW, 128))
    HWp = _round_up(HW, tile)
    f, m = fts_px, masks
    if HWp != HW:
        f = jnp.pad(f, ((0, HWp - HW), (0, 0)))
        m = jnp.pad(m, ((0, 0), (0, HWp - HW)))
    return pl.pallas_call(
        _pool_num_kernel,
        out_shape=jax.ShapeDtypeStruct((S2, C), jnp.float32),
        grid=(C // c_blk, HWp // tile),
        in_specs=[pl.BlockSpec((S2, tile), lambda c, k: (0, k)),
                  pl.BlockSpec((tile, c_blk), lambda c, k: (k, c))],
        out_specs=pl.BlockSpec((S2, c_blk), lambda c, k: (0, c)),
        scratch_shapes=[pltpu.VMEM((S2, c_blk), jnp.float32)],
        compiler_params=pltpu.CompilerParams(
            dimension_semantics=("parallel", "arbitrary")),
    )(m, f)


# --------------------- scaled cosine similarity map -------------------------

def _cos_dist_kernel(f_ref, p_ref, o_ref):
    # f: (tile_hw, C) bf16 pixels-major; p: (1, C) f32 prototype already scaled
    # by 20 / max(||p||, eps)  (grid-invariant norm hoisted out of the kernel).
    f = f_ref[...].astype(jnp.float32)
    p = p_ref[...]
    dot = jnp.sum(f * p, axis=1, keepdims=True)                   # (tile, 1)
    fn = jnp.sqrt(jnp.sum(f * f, axis=1, keepdims=True))          # (tile, 1)
    o_ref[...] = dot / jnp.maximum(fn, 1e-8)


def cal_dist_fg(fts_px, p_scaled_row, H, W, *, tile_hw=2048):
    """BaseExtendSam.calDist_fg(): 20 * cosine_similarity along channels."""
    HW, C = fts_px.shape
    tile = min(tile_hw, _round_up(HW, 128))
    HWp = _round_up(HW, tile)
    f = fts_px
    if HWp != HW:
        f = jnp.pad(f, ((0, HWp - HW), (0, 0)))
    dist = pl.pallas_call(
        _cos_dist_kernel,
        out_shape=jax.ShapeDtypeStruct((HWp, 1), jnp.float32),
        grid=(HWp // tile,),
        in_specs=[pl.BlockSpec((tile, C), lambda i: (i, 0)),
                  pl.BlockSpec((1, C), lambda i: (0, 0))],
        out_specs=pl.BlockSpec((tile, 1), lambda i: (i, 0)),
        compiler_params=pltpu.CompilerParams(
            dimension_semantics=("parallel",)),
    )(f, p_scaled_row.astype(jnp.float32))
    return dist[:HW, 0].reshape(1, H, W)


# ------------------- mask multiply, fused over all shots --------------------

def _mask_mul_kernel(f_ref, m_ref, o_ref):
    # f: (tile_hw, C) bf16, m: (S, tile_hw) bf16 -> o: (S, tile_hw, C) bf16
    o_ref[...] = m_ref[...][:, :, None] * f_ref[...][None, :, :]


def masked_features_fused(fts_px, masks_rs, H, W, *, tile_hw=2048):
    """BaseExtendSam.getMaskFeatures() for all S shots in one grid sweep.

    fts_px: (HW, C) bf16 support features (pixels-major, read from HBM once).
    masks_rs: (S, HW) bf16 masks resized to feature resolution.
    Returns (S, H, W, C) bf16 (channels-last; torch equivalent is (S, C, H, W)).
    """
    HW, C = fts_px.shape
    S = masks_rs.shape[0]
    tile = min(tile_hw, _round_up(HW, 128))
    HWp = _round_up(HW, tile)
    f, m = fts_px, masks_rs
    if HWp != HW:
        f = jnp.pad(f, ((0, HWp - HW), (0, 0)))
        m = jnp.pad(m, ((0, 0), (0, HWp - HW)))
    out = pl.pallas_call(
        _mask_mul_kernel,
        out_shape=jax.ShapeDtypeStruct((S, HWp, C), jnp.bfloat16),
        grid=(HWp // tile,),
        in_specs=[pl.BlockSpec((tile, C), lambda i: (i, 0)),
                  pl.BlockSpec((S, tile), lambda i: (0, i))],
        out_specs=pl.BlockSpec((S, tile, C), lambda i: (0, i, 0)),
        compiler_params=pltpu.CompilerParams(
            dimension_semantics=("parallel",)),
    )(f, m)
    return out[:, :HW, :].reshape(S, H, W, C)


# -------------------------------- LayerNorm2d -------------------------------

def _layernorm2d_kernel(x_ref, w_ref, b_ref, o_ref):
    # x: (tile_m, C) pixels-major, channel axis on lanes; per-pixel LayerNorm.
    x = x_ref[...]
    u = jnp.mean(x, axis=1, keepdims=True)
    s = jnp.mean((x - u) ** 2, axis=1, keepdims=True)
    xn = (x - u) * jax.lax.rsqrt(s + 1e-6)          # rsqrt -> EUP slot
    o_ref[...] = w_ref[...] * xn + b_ref[...]


def layernorm2d(x_nchw, weight_c, bias_c, *, tile_m=1024):
    """LayerNorm2d (declared for compress_vit_feat / embedding_encoder)."""
    N, C, H, W = x_nchw.shape
    M = N * H * W
    tile = min(tile_m, _round_up(M, 8))
    Mp = _round_up(M, tile)
    x = jnp.transpose(x_nchw, (0, 2, 3, 1)).reshape(M, C).astype(jnp.float32)
    if Mp != M:
        x = jnp.pad(x, ((0, Mp - M), (0, 0)))
    w = weight_c.reshape(1, C).astype(jnp.float32)
    b = bias_c.reshape(1, C).astype(jnp.float32)
    out = pl.pallas_call(
        _layernorm2d_kernel,
        out_shape=jax.ShapeDtypeStruct((Mp, C), jnp.float32),
        grid=(Mp // tile,),
        in_specs=[pl.BlockSpec((tile, C), lambda i: (i, 0)),
                  pl.BlockSpec((1, C), lambda i: (0, 0)),
                  pl.BlockSpec((1, C), lambda i: (0, 0))],
        out_specs=pl.BlockSpec((tile, C), lambda i: (i, 0)),
        compiler_params=pltpu.CompilerParams(
            dimension_semantics=("parallel",)),
    )(x, w, b)
    return jnp.transpose(out[:M].reshape(N, H, W, C), (0, 3, 1, 2))


# ------------------------------- forward glue -------------------------------

def base_extend_sam_forward(params, x_enc, interm_embeddings, supportMasks,
                            queryLabels, rng_key):
    """BaseExtendSam.forward up to the point where undefined sub-modules appear.

    x_enc:             (B, C_enc, H, W)   SAM image-encoder output (NCHW)
    interm_embeddings: list of (B, H, W, C_vit) ViT intermediates (NHWC)
    supportMasks:      (1, S, Hm, Wm) binary {0, 1}
    queryLabels:       unused (also unused by the original forward)
    """
    # TODO(synk): self.img_adapter (SAM ViT image encoder) is not in the
    # provided source; its outputs (x_enc, interm_embeddings) are inputs here.
    B, C_enc, H, W = x_enc.shape
    orix = x_enc[1:2]                                         # x[1].unsqueeze(0)

    # --- DRconv2(x) + DRconv1_L(interm0) + DRconv1_L(interm2) + concat, fused
    x_cat_cl = fused_dr_concat(x_enc, interm_embeddings[0],
                               interm_embeddings[2], params)  # (B,H,W,Ccat) bf16
    C_cat = x_cat_cl.shape[-1]
    supp_px = x_cat_cl[0].reshape(H * W, C_cat)               # support features
    query_px = x_cat_cl[1].reshape(H * W, C_cat)              # query features

    # --- masked average pooling: fg & bg, via bilinear-adjoint masks ---------
    supportMasks_fg = jnp.transpose(supportMasks, (1, 0, 2, 3))   # (S,1,Hm,Wm)
    S = supportMasks_fg.shape[0]
    Hm, Wm = supportMasks_fg.shape[-2:]
    fg = supportMasks_fg.reshape(S, Hm, Wm).astype(jnp.float32)
    bg = (fg == 0).astype(jnp.float32)                            # logical_not
    masks_2s_hi = jnp.concatenate([fg, bg], axis=0)               # (2S, Hm, Wm)
    # exact torch denominator: mask.sum over mask-resolution pixels
    den = jnp.sum(masks_2s_hi.reshape(2 * S, -1), axis=1, keepdims=True)
    # adjoint-downsample the masks to feature resolution (exact identity)
    masks_adj = _bilinear_adjoint(masks_2s_hi, (H, W)).reshape(2 * S, H * W)

    num = masked_pool_numerator(supp_px, masks_adj.astype(jnp.bfloat16))
    pooled = num / (den + 1e-5)                                   # (2S, C) f32
    supp_fg_fts = pooled[:S][None]                                # (1, S, C)
    supp_bg_fts = pooled[S:][None]                                # (1, S, C)

    # --- getPrototype_learnable (n_ways == 1), matching torch shapes exactly -
    n_shots = S
    fg_prototypes_mean = jnp.sum(supp_fg_fts[0], axis=0) / n_shots       # (C,)
    if n_shots == 1:
        fg_prototypes_var = jnp.zeros_like(supp_fg_fts[0])               # (1, C)
    else:
        fg_prototypes_var = jnp.var(supp_fg_fts[0], axis=0, ddof=1)      # (C,)
    bg_prototype_mean = jnp.sum(supp_bg_fts[0], axis=0) / n_shots

    eps1 = jax.random.normal(rng_key, fg_prototypes_var.shape, dtype=jnp.float32)
    fg_prototypes = (params['LRweight1'] * fg_prototypes_mean
                     + eps1 * fg_prototypes_var * params['LRweight2'])
    # NOTE: for n_shots > 1 fg_prototypes is (C,) and fg_prototypes[0] is a
    # scalar -- this mirrors the original torch code's degenerate multi-shot path.
    proto = jnp.broadcast_to(fg_prototypes[0], (C_cat,))

    # prototype norm + 20x scaler hoisted out of the cosine kernel (grid-invariant)
    p_norm = jnp.sqrt(jnp.sum(proto * proto))
    p_scaled = (20.0 * proto / jnp.maximum(p_norm, 1e-8)).reshape(1, C_cat)

    # --- cosine-similarity distance map for the query embedding --------------
    dist_fg = cal_dist_fg(query_px, p_scaled, H, W)               # (1, H, W)

    # --- getMaskFeatures: support embedding * resized fg mask, all shots fused
    # TODO(synk): jax.image.resize bilinear ~ torch align_corners=False;
    # antialias=False matches torch (no antialiasing on downscale).
    mask_rs = jax.image.resize(supportMasks_fg.astype(jnp.float32),
                               (S, 1, H, W), method='bilinear', antialias=False)
    supp_mask_fts = masked_features_fused(
        supp_px, mask_rs.reshape(S, H * W).astype(jnp.bfloat16), H, W)
    # supp_mask_fts is channels-last (S, H, W, C); torch layout is (S, C, H, W).

    # TODO(synk): CSAttention, AffinityLearner, prompt_adapter,
    # SparsePromptLearner and mask_adapter are not defined in the provided
    # source, so low_res_masks / iou_predictions cannot be produced faithfully;
    # the Pallas-computed intermediates are returned instead.
    return (dist_fg, supp_mask_fts, fg_prototypes, supp_fg_fts, supp_bg_fts,
            orix, bg_prototype_mean)


# ----------------------------------- main -----------------------------------

if __name__ == "__main__":
    key = jax.random.PRNGKey(0)
    kx, k0, k2, km, kw1, kw2, kl1, kl2, keps, kln = jax.random.split(key, 10)

    # Small stand-ins for SAM shapes (real: 2x256x64x64 features, 2x64x64x1024 interms).
    B, H, W = 2, 16, 16
    C_enc, C_vit = 16, 32
    C_dr1, C_dr2 = 8, 16              # DRconv1_L / DRconv2 output channels
    C_cat = C_dr2 + 2 * C_dr1         # channels after concat (real model: 256)
    S = 1                             # one support shot
    Hm, Wm = 32, 32                   # mask resolution (exercises the adjoint path)

    x_enc = jax.random.normal(kx, (B, C_enc, H, W), dtype=jnp.float32)
    interm_embeddings = [
        jax.random.normal(k0, (B, H, W, C_vit), dtype=jnp.float32),   # interm[0]
        jnp.zeros((B, H, W, C_vit), jnp.float32),                     # interm[1] unused
        jax.random.normal(k2, (B, H, W, C_vit), dtype=jnp.float32),   # interm[2]
    ]
    supportMasks = (jax.random.uniform(km, (1, S, Hm, Wm)) > 0.5).astype(jnp.float32)
    queryLabels = jnp.zeros((1, H, W), jnp.float32)   # unused by forward

    params = {
        'W_dr1': 0.05 * jax.random.normal(kw1, (C_dr1, C_vit), dtype=jnp.float32),
        'b_dr1': jnp.zeros((C_dr1,), jnp.float32),
        'W_dr2': 0.05 * jax.random.normal(kw2, (C_dr2, C_enc), dtype=jnp.float32),
        'b_dr2': jnp.zeros((C_dr2,), jnp.float32),
        'LRweight1': jax.random.uniform(kl1, (C_cat,), dtype=jnp.float32),
        'LRweight2': jax.random.uniform(kl2, (C_cat,), dtype=jnp.float32),
    }

    fwd = jax.jit(base_extend_sam_forward)
    outs = fwd(params, x_enc, interm_embeddings, supportMasks, queryLabels, keps)
    outs = jax.block_until_ready(outs)

    # LayerNorm2d is declared in the module (compress_vit_feat / embedding_encoder)
    # but never called by forward -- validate the Pallas kernel standalone.
    ln_out = layernorm2d(jax.random.normal(kln, (1, C_cat, H, W), jnp.float32),
                         jnp.ones((C_cat,), jnp.float32),
                         jnp.zeros((C_cat,), jnp.float32))
    jax.block_until_ready(ln_out)

    print("KERNEL_OK")
</pallas_src>

<mosaic_0001>
module attributes {stable_mosaic.version = 11 : i64} {
  func.func @_fused_dr_kernel(%arg0: i32, %arg1: memref<512x16xbf16, #tpu.memory_space<vmem>>, %arg2: memref<512x32xbf16, #tpu.memory_space<vmem>>, %arg3: memref<512x32xbf16, #tpu.memory_space<vmem>>, %arg4: memref<16x32xbf16, #tpu.memory_space<vmem>>, %arg5: memref<32x32xbf16, #tpu.memory_space<vmem>>, %arg6: memref<32x32xbf16, #tpu.memory_space<vmem>>, %arg7: memref<1x32xf32, #tpu.memory_space<vmem>>, %arg8: memref<512x32xbf16, #tpu.memory_space<vmem>>) attributes {dimension_semantics = [#tpu.dimension_semantics<parallel>], iteration_bounds = array<i64: 1>, scalar_prefetch = 0 : i64, scratch_operands = 0 : i64, tpu.core_type = #tpu.core_type<tc>, window_params = [{transform_indices = @transform_0, window_bounds = array<i64: 512, 16>}, {transform_indices = @transform_1, window_bounds = array<i64: 512, 32>}, {transform_indices = @transform_2, window_bounds = array<i64: 512, 32>}, {pipeline_mode = #tpu.pipeline_mode<synchronous>, transform_indices = @transform_3, window_bounds = array<i64: 16, 32>}, {pipeline_mode = #tpu.pipeline_mode<synchronous>, transform_indices = @transform_4, window_bounds = array<i64: 32, 32>}, {pipeline_mode = #tpu.pipeline_mode<synchronous>, transform_indices = @transform_5, window_bounds = array<i64: 32, 32>}, {pipeline_mode = #tpu.pipeline_mode<synchronous>, transform_indices = @transform_6, window_bounds = array<i64: 1, 32>}, {transform_indices = @transform_7, window_bounds = array<i64: 512, 32>}]} {
    %c0 = arith.constant 0 : index
    %c0_0 = arith.constant 0 : index
    %0 = vector.load %arg1[%c0, %c0_0] : memref<512x16xbf16, #tpu.memory_space<vmem>>, vector<512x16xbf16>
    %c0_1 = arith.constant 0 : index
    %c0_2 = arith.constant 0 : index
    %1 = vector.load %arg4[%c0_1, %c0_2] : memref<16x32xbf16, #tpu.memory_space<vmem>>, vector<16x32xbf16>
    %cst = arith.constant dense<0.000000e+00> : vector<512x32xf32>
    %2 = tpu.matmul %0, %1, %cst {dimension_numbers = #tpu.dot_dimension_numbers<[1], [0], [0], [1], [0, 0, 1, 1], [], []>} : vector<512x16xbf16>, vector<16x32xbf16>, vector<512x32xf32> -> vector<512x32xf32>
    %c0_3 = arith.constant 0 : index
    %c0_4 = arith.constant 0 : index
    %3 = vector.load %arg2[%c0_3, %c0_4] : memref<512x32xbf16, #tpu.memory_space<vmem>>, vector<512x32xbf16>
    %c0_5 = arith.constant 0 : index
    %c0_6 = arith.constant 0 : index
    %4 = vector.load %arg5[%c0_5, %c0_6] : memref<32x32xbf16, #tpu.memory_space<vmem>>, vector<32x32xbf16>
    %cst_7 = arith.constant dense<0.000000e+00> : vector<512x32xf32>
    %5 = tpu.matmul %3, %4, %cst_7 {dimension_numbers = #tpu.dot_dimension_numbers<[1], [0], [0], [1], [0, 0, 1, 1], [], []>} : vector<512x32xbf16>, vector<32x32xbf16>, vector<512x32xf32> -> vector<512x32xf32>
    %6 = arith.addf %2, %5 : vector<512x32xf32>
    %c0_8 = arith.constant 0 : index
    %c0_9 = arith.constant 0 : index
    %7 = vector.load %arg3[%c0_8, %c0_9] : memref<512x32xbf16, #tpu.memory_space<vmem>>, vector<512x32xbf16>
    %c0_10 = arith.constant 0 : index
    %c0_11 = arith.constant 0 : index
    %8 = vector.load %arg6[%c0_10, %c0_11] : memref<32x32xbf16, #tpu.memory_space<vmem>>, vector<32x32xbf16>
    %cst_12 = arith.constant dense<0.000000e+00> : vector<512x32xf32>
    %9 = tpu.matmul %7, %8, %cst_12 {dimension_numbers = #tpu.dot_dimension_numbers<[1], [0], [0], [1], [0, 0, 1, 1], [], []>} : vector<512x32xbf16>, vector<32x32xbf16>, vector<512x32xf32> -> vector<512x32xf32>
    %10 = arith.addf %6, %9 : vector<512x32xf32>
    %c0_13 = arith.constant 0 : index
    %c0_14 = arith.constant 0 : index
    %11 = vector.load %arg7[%c0_13, %c0_14] : memref<1x32xf32, #tpu.memory_space<vmem>>, vector<1x32xf32>
    %12 = vector.broadcast %11 : vector<1x32xf32> to vector<512x32xf32>
    %13 = arith.addf %10, %12 : vector<512x32xf32>
    %14 = arith.truncf %13 : vector<512x32xf32> to vector<512x32xbf16>
    %c0_15 = arith.constant 0 : index
    %c0_16 = arith.constant 0 : index
    %15 = vector.load %arg8[%c0_15, %c0_16] : memref<512x32xbf16, #tpu.memory_space<vmem>>, vector<512x32xbf16>
    tpu.vector_store %arg8[%c0_15, %c0_16], %14 {strides = array<i32>} : memref<512x32xbf16, #tpu.memory_space<vmem>>, vector<512x32xbf16>,
    return
  }
  func.func @transform_0(%arg0: i32) -> (i32, i32) {
    %c0_i32 = arith.constant 0 : i32
    %c0_i32_0 = arith.constant 0 : i32
    return %arg0, %c0_i32 : i32, i32
  }
  func.func @transform_1(%arg0: i32) -> (i32, i32) {
    %c0_i32 = arith.constant 0 : i32
    %c0_i32_0 = arith.constant 0 : i32
    return %arg0, %c0_i32 : i32, i32
  }
  func.func @transform_2(%arg0: i32) -> (i32, i32) {
    %c0_i32 = arith.constant 0 : i32
    %c0_i32_0 = arith.constant 0 : i32
    return %arg0, %c0_i32 : i32, i32
  }
  func.func @transform_3(%arg0: i32) -> (i32, i32) {
    %c0_i32 = arith.constant 0 : i32
    %c0_i32_0 = arith.constant 0 : i32
    %c0_i32_1 = arith.constant 0 : i32
    return %c0_i32, %c0_i32_0 : i32, i32
  }
  func.func @transform_4(%arg0: i32) -> (i32, i32) {
    %c0_i32 = arith.constant 0 : i32
    %c0_i32_0 = arith.constant 0 : i32
    %c0_i32_1 = arith.constant 0 : i32
    return %c0_i32, %c0_i32_0 : i32, i32
  }
  func.func @transform_5(%arg0: i32) -> (i32, i32) {
    %c0_i32 = arith.constant 0 : i32
    %c0_i32_0 = arith.constant 0 : i32
    %c0_i32_1 = arith.constant 0 : i32
    return %c0_i32, %c0_i32_0 : i32, i32
  }
  func.func @transform_6(%arg0: i32) -> (i32, i32) {
    %c0_i32 = arith.constant 0 : i32
    %c0_i32_0 = arith.constant 0 : i32
    %c0_i32_1 = arith.constant 0 : i32
    return %c0_i32, %c0_i32_0 : i32, i32
  }
  func.func @transform_7(%arg0: i32) -> (i32, i32) {
    %c0_i32 = arith.constant 0 : i32
    %c0_i32_0 = arith.constant 0 : i32
    return %arg0, %c0_i32 : i32, i32
  }
}

module attributes {stable_mosaic.version = 11 : i64} {
  func.func @_pool_num_kernel(%arg0: i32, %arg1: i32, %arg2: memref<2x256xbf16, #tpu.memory_space<vmem>>, %arg3: memref<256x32xbf16, #tpu.memory_space<vmem>>, %arg4: memref<2x32xf32, #tpu.memory_space<vmem>>, %arg5: memref<2x32xf32, #tpu.memory_space<vmem>>) attributes {dimension_semantics = [#tpu.dimension_semantics<parallel>, #tpu.dimension_semantics<arbitrary>], iteration_bounds = array<i64: 1, 1>, scalar_prefetch = 0 : i64, scratch_operands = 1 : i64, tpu.core_type = #tpu.core_type<tc>, window_params = [{transform_indices = @transform_0, window_bounds = array<i64: 2, 256>}, {transform_indices = @transform_1, window_bounds = array<i64: 256, 32>}, {transform_indices = @transform_2, window_bounds = array<i64: 2, 32>}]} {
    %c0_i32 = arith.constant 0 : i32
    %0 = arith.cmpi eq, %arg1, %c0_i32 : i32
    %1 = arith.extui %0 : i1 to i32
    %c0_i32_0 = arith.constant 0 : i32
    %2 = arith.cmpi ne, %1, %c0_i32_0 : i32
    scf.if %2 {
      %cst_10 = arith.constant 0.000000e+00 : f32
      %12 = vector.broadcast %cst_10 : f32 to vector<2x32xf32>
      %c0_11 = arith.constant 0 : index
      %c0_12 = arith.constant 0 : index
      %13 = vector.load %arg5[%c0_11, %c0_12] : memref<2x32xf32, #tpu.memory_space<vmem>>, vector<2x32xf32>
      tpu.vector_store %arg5[%c0_11, %c0_12], %12 {strides = array<i32>} : memref<2x32xf32, #tpu.memory_space<vmem>>, vector<2x32xf32>,
    } else {
    }
    %c0 = arith.constant 0 : index
    %c0_1 = arith.constant 0 : index
    %3 = vector.load %arg5[%c0, %c0_1] : memref<2x32xf32, #tpu.memory_space<vmem>>, vector<2x32xf32>
    %c0_2 = arith.constant 0 : index
    %c0_3 = arith.constant 0 : index
    %4 = vector.load %arg2[%c0_2, %c0_3] : memref<2x256xbf16, #tpu.memory_space<vmem>>, vector<2x256xbf16>
    %c0_4 = arith.constant 0 : index
    %c0_5 = arith.constant 0 : index
    %5 = vector.load %arg3[%c0_4, %c0_5] : memref<256x32xbf16, #tpu.memory_space<vmem>>, vector<256x32xbf16>
    %cst = arith.constant dense<0.000000e+00> : vector<2x32xf32>
    %6 = tpu.matmul %4, %5, %cst {dimension_numbers = #tpu.dot_dimension_numbers<[1], [0], [0], [1], [0, 0, 1, 1], [], []>} : vector<2x256xbf16>, vector<256x32xbf16>, vector<2x32xf32> -> vector<2x32xf32>
    %7 = arith.addf %3, %6 : vector<2x32xf32>
    %c0_6 = arith.constant 0 : index
    %c0_7 = arith.constant 0 : index
    %8 = vector.load %arg5[%c0_6, %c0_7] : memref<2x32xf32, #tpu.memory_space<vmem>>, vector<2x32xf32>
    tpu.vector_store %arg5[%c0_6, %c0_7], %7 {strides = array<i32>} : memref<2x32xf32, #tpu.memory_space<vmem>>, vector<2x32xf32>,
    %c0_i32_8 = arith.constant 0 : i32
    %9 = arith.cmpi eq, %arg1, %c0_i32_8 : i32
    %10 = arith.extui %9 : i1 to i32
    %c0_i32_9 = arith.constant 0 : i32
    %11 = arith.cmpi ne, %10, %c0_i32_9 : i32
    scf.if %11 {
      %c0_10 = arith.constant 0 : index
      %c0_11 = arith.constant 0 : index
      %12 = vector.load %arg5[%c0_10, %c0_11] : memref<2x32xf32, #tpu.memory_space<vmem>>, vector<2x32xf32>
      %c0_12 = arith.constant 0 : index
      %c0_13 = arith.constant 0 : index
      %13 = vector.load %arg4[%c0_12, %c0_13] : memref<2x32xf32, #tpu.memory_space<vmem>>, vector<2x32xf32>
      tpu.vector_store %arg4[%c0_12, %c0_13], %12 {strides = array<i32>} : memref<2x32xf32, #tpu.memory_space<vmem>>, vector<2x32xf32>,
    } else {
    }
    return
  }
  func.func @transform_0(%arg0: i32, %arg1: i32) -> (i32, i32) {
    %c0_i32 = arith.constant 0 : i32
    %c0_i32_0 = arith.constant 0 : i32
    return %c0_i32, %arg1 : i32, i32
  }
  func.func @transform_1(%arg0: i32, %arg1: i32) -> (i32, i32) {
    %c0_i32 = arith.constant 0 : i32
    return %arg1, %arg0 : i32, i32
  }
  func.func @transform_2(%arg0: i32, %arg1: i32) -> (i32, i32) {
    %c0_i32 = arith.constant 0 : i32
    %c0_i32_0 = arith.constant 0 : i32
    return %c0_i32, %arg0 : i32, i32
  }
}

module attributes {stable_mosaic.version = 11 : i64} {
  func.func @_cos_dist_kernel(%arg0: i32, %arg1: memref<256x32xbf16, #tpu.memory_space<vmem>>, %arg2: memref<1x32xf32, #tpu.memory_space<vmem>>, %arg3: memref<256x1xf32, #tpu.memory_space<vmem>>) attributes {dimension_semantics = [#tpu.dimension_semantics<parallel>], iteration_bounds = array<i64: 1>, scalar_prefetch = 0 : i64, scratch_operands = 0 : i64, tpu.core_type = #tpu.core_type<tc>, window_params = [{transform_indices = @transform_0, window_bounds = array<i64: 256, 32>}, {pipeline_mode = #tpu.pipeline_mode<synchronous>, transform_indices = @transform_1, window_bounds = array<i64: 1, 32>}, {transform_indices = @transform_2, window_bounds = array<i64: 256, 1>}]} {
    %c0 = arith.constant 0 : index
    %c0_0 = arith.constant 0 : index
    %0 = vector.load %arg1[%c0, %c0_0] : memref<256x32xbf16, #tpu.memory_space<vmem>>, vector<256x32xbf16>
    %1 = arith.extf %0 : vector<256x32xbf16> to vector<256x32xf32>
    %c0_1 = arith.constant 0 : index
    %c0_2 = arith.constant 0 : index
    %2 = vector.load %arg2[%c0_1, %c0_2] : memref<1x32xf32, #tpu.memory_space<vmem>>, vector<1x32xf32>
    %3 = vector.broadcast %2 : vector<1x32xf32> to vector<256x32xf32>
    %4 = arith.mulf %1, %3 : vector<256x32xf32>
    %cst = arith.constant dense<0.000000e+00> : vector<256xf32>
    %5 = vector.multi_reduction <add>, %4, %cst [1] : vector<256x32xf32> to vector<256xf32>
    %6 = vector.shape_cast %5 : vector<256xf32> to vector<256x1xf32>
    %7 = arith.mulf %1, %1 : vector<256x32xf32>
    %cst_3 = arith.constant dense<0.000000e+00> : vector<256xf32>
    %8 = vector.multi_reduction <add>, %7, %cst_3 [1] : vector<256x32xf32> to vector<256xf32>
    %9 = vector.shape_cast %8 : vector<256xf32> to vector<256x1xf32>
    %10 = math.sqrt %9 : vector<256x1xf32>
    %cst_4 = arith.constant 9.99999993E-9 : f32
    %11 = vector.broadcast %cst_4 : f32 to vector<256x1xf32>
    %12 = arith.maximumf %10, %11 : vector<256x1xf32>
    %13 = arith.divf %6, %12 : vector<256x1xf32>
    %c0_5 = arith.constant 0 : index
    %c0_6 = arith.constant 0 : index
    %14 = vector.load %arg3[%c0_5, %c0_6] : memref<256x1xf32, #tpu.memory_space<vmem>>, vector<256x1xf32>
    tpu.vector_store %arg3[%c0_5, %c0_6], %13 {strides = array<i32>} : memref<256x1xf32, #tpu.memory_space<vmem>>, vector<256x1xf32>,
    return
  }
  func.func @transform_0(%arg0: i32) -> (i32, i32) {
    %c0_i32 = arith.constant 0 : i32
    %c0_i32_0 = arith.constant 0 : i32
    return %arg0, %c0_i32 : i32, i32
  }
  func.func @transform_1(%arg0: i32) -> (i32, i32) {
    %c0_i32 = arith.constant 0 : i32
    %c0_i32_0 = arith.constant 0 : i32
    %c0_i32_1 = arith.constant 0 : i32
    return %c0_i32, %c0_i32_0 : i32, i32
  }
  func.func @transform_2(%arg0: i32) -> (i32, i32) {
    %c0_i32 = arith.constant 0 : i32
    %c0_i32_0 = arith.constant 0 : i32
    return %arg0, %c0_i32 : i32, i32
  }
}

module attributes {stable_mosaic.version = 11 : i64} {
  func.func @_mask_mul_kernel(%arg0: i32, %arg1: memref<256x32xbf16, #tpu.memory_space<vmem>>, %arg2: memref<1x256xbf16, #tpu.memory_space<vmem>>, %arg3: memref<1x256x32xbf16, #tpu.memory_space<vmem>>) attributes {dimension_semantics = [#tpu.dimension_semantics<parallel>], iteration_bounds = array<i64: 1>, scalar_prefetch = 0 : i64, scratch_operands = 0 : i64, tpu.core_type = #tpu.core_type<tc>, window_params = [{transform_indices = @transform_0, window_bounds = array<i64: 256, 32>}, {transform_indices = @transform_1, window_bounds = array<i64: 1, 256>}, {transform_indices = @transform_2, window_bounds = array<i64: 1, 256, 32>}]} {
    %c0 = arith.constant 0 : index
    %c0_0 = arith.constant 0 : index
    %0 = vector.load %arg2[%c0, %c0_0] : memref<1x256xbf16, #tpu.memory_space<vmem>>, vector<1x256xbf16>
    %1 = vector.shape_cast %0 : vector<1x256xbf16> to vector<1x256x1xbf16>
    %c0_1 = arith.constant 0 : index
    %c0_2 = arith.constant 0 : index
    %2 = vector.load %arg1[%c0_1, %c0_2] : memref<256x32xbf16, #tpu.memory_space<vmem>>, vector<256x32xbf16>
    %3 = vector.shape_cast %2 : vector<256x32xbf16> to vector<1x256x32xbf16>
    %4 = vector.broadcast %1 : vector<1x256x1xbf16> to vector<1x256x32xbf16>
    %5 = arith.mulf %4, %3 : vector<1x256x32xbf16>
    %c0_3 = arith.constant 0 : index
    %c0_4 = arith.constant 0 : index
    %c0_5 = arith.constant 0 : index
    %6 = vector.load %arg3[%c0_3, %c0_4, %c0_5] : memref<1x256x32xbf16, #tpu.memory_space<vmem>>, vector<1x256x32xbf16>
    tpu.vector_store %arg3[%c0_3, %c0_4, %c0_5], %5 {strides = array<i32>} : memref<1x256x32xbf16, #tpu.memory_space<vmem>>, vector<1x256x32xbf16>,
    return
  }
  func.func @transform_0(%arg0: i32) -> (i32, i32) {
    %c0_i32 = arith.constant 0 : i32
    %c0_i32_0 = arith.constant 0 : i32
    return %arg0, %c0_i32 : i32, i32
  }
  func.func @transform_1(%arg0: i32) -> (i32, i32) {
    %c0_i32 = arith.constant 0 : i32
    %c0_i32_0 = arith.constant 0 : i32
    return %c0_i32, %arg0 : i32, i32
  }
  func.func @transform_2(%arg0: i32) -> (i32, i32, i32) {
    %c0_i32 = arith.constant 0 : i32
    %c0_i32_0 = arith.constant 0 : i32
    %c0_i32_1 = arith.constant 0 : i32
    return %c0_i32, %arg0, %c0_i32_0 : i32, i32, i32
  }
}

</mosaic_0001>

<bundles_post_ra>
// kernel: squeeze.11
= control target key start
LH: loop header
LB: loop body
LE: loop exit
PB: predicated region body
PF: predicated region fallthrough
CT: control target
= control target key end

     0   :  { %s135_s0 = inlined_call_operand.vmem [shape: f32[256], index: 0, kind: input, shape index: {}]   ;;  %s136_s1 = inlined_call_operand.hbm [shape: f32[1,16,16], index: 1, kind: output, shape index: {}]  }
   0x1   :  { %v5_v0 = vld [vmem:[%s135_s0] sm:$0x3] }
   0x2   :  { %6 = vst [vmem:[#allocation2] sm:$0x3] %v5_v0 }
   0x3   :  { %2 = vsyncpa [#allocation1], 0  ;;  %s94_s0 = smov 112   ;;  %s95_s8 = smov 80   ;;  %vm8_vm0 = vcmask 130048  }
   0x4   :  { %s96_s9 = smov 96   ;;  %s97_s10 = smov 64  }
   0x5   :  { %s98_s11 = smov 48   ;;  %s99_s12 = smov 32  }
   0x6   :  { %s100_s13 = smov 16   ;;  %s101_s14 = smov [#allocation0]  }
   0x7   :  { %s56_s15 = sshll.u32 %s101_s14, 4  ;;  %s57_s15 = int_to_ptr.vmem [resolvable:$true] %s56_s15 }
   0x8   :  { %s70_s16 = scalar_lea.vmem %s57_s15, 256  ;;  %p75_p1 = scmp.lt.s32.totalorder %s57_s15, %s57_s15 }
   0x9   :  { %v10_v1 = vld [vmem:[#allocation2] sm:$0x3]   ;;  %p71_p0 = scmp.ne.s32.totalorder %s57_s15, %s70_s16  ;;  %p76_p2 = scmp.lt.s32.totalorder %s70_s16, %s70_s16 }
   0xa   :  { %v22_v2 = vld [vmem:[#allocation2] sm:$0x3]   ;;  %11 = vrot.lane.b32.xlu0 %v10_v1, %s94_s0 }
   0xb   :  { %23 = vrot.lane.b32.xlu1 %v22_v2, %s95_s8  ;;  %v16_v3 = vld [vmem:[#allocation2] sm:$0x3]   ;;  %p77_p3 = por %p76_p2, %p75_p1 }
   0xc   :  { %v28_v4 = vld [vmem:[#allocation2] sm:$0x3]  }
   0xd   :  { %v7_v5 = vld [vmem:[#allocation2] sm:$0x3]   ;;  %p78_p4 = pnand %p77_p3, %p71_p0 }
   0xe   :  { %9 = vst.msk [vmem:[#allocation0] ss:$8 sm:$0x3] %vm8_vm0, %v7_v5   ;;  %17 = vrot.lane.b32.xlu0 %v16_v3, %s96_s9  ;;  %v34_v6 = vld [vmem:[#allocation2] sm:$0x3]  }
   0xf   :  { %29 = vrot.lane.b32.xlu1 %v28_v4, %s97_s10  ;;  %v40_v7 = vld [vmem:[#allocation2] sm:$0x3]  }
  0x10   :  { %v46_v8 = vld [vmem:[#allocation2] sm:$0x3]  }
  0x12   :  { %35 = vrot.lane.b32.xlu0 %v34_v6, %s98_s11 }
  0x13   :  { %41 = vrot.lane.b32.xlu1 %v40_v7, %s99_s12 }
  0x16   :  { %47 = vrot.lane.b32.xlu0 %v46_v8, %s100_s13 }
  0x7c   :  { %v12_v9 = vpop.permute.xlu0 %11  }
  0x7d   :  { %v24_v10 = vpop.permute.xlu1 %23   ;;  %15 = vst.msk [vmem:[#allocation0 + $0x1] ss:$8 sm:$0x3] %vm8_vm0, %v12_v9  }
  0x7e   :  { %27 = vst.msk [vmem:[#allocation0 + $0x3] ss:$8 sm:$0x3] %vm8_vm0, %v24_v10  }
  0x80   :  { %v18_v11 = vpop.permute.xlu0 %17  }
  0x81   :  { %v30_v12 = vpop.permute.xlu1 %29   ;;  %21 = vst.msk [vmem:[#allocation0 + $0x2] ss:$8 sm:$0x3] %vm8_vm0, %v18_v11  }
  0x82   :  { %33 = vst.msk [vmem:[#allocation0 + $0x4] ss:$8 sm:$0x3] %vm8_vm0, %v30_v12  }
  0x84   :  { %v36_v13 = vpop.permute.xlu0 %35  }
  0x85   :  { %v42_v14 = vpop.permute.xlu1 %41   ;;  %39 = vst.msk [vmem:[#allocation0 + $0x5] ss:$8 sm:$0x3] %vm8_vm0, %v36_v13  }
  0x86   :  { %45 = vst.msk [vmem:[#allocation0 + $0x6] ss:$8 sm:$0x3] %vm8_vm0, %v42_v14  }
  0x88   :  { %v48_v15 = vpop.permute.xlu0 %47  }
  0x89   :  { %51 = vst.msk [vmem:[#allocation0 + $0x7] ss:$8 sm:$0x3] %vm8_vm0, %v48_v15  }
  0x8a   :  { %81 = shalt.err (!%p78_p4)
}
  0x8b   :  { %s82_s19 = scalar_lea.hbm %s136_s1, 256 }
  0x8c   :  { %p83_p5 = scmp.ne.s32.totalorder %s136_s1, %s82_s19  ;;  %p86_p6 = scmp.lt.u32.totalorder %s82_s19, %s136_s1 }
  0x8e   :  { %p88_p7 = pnand %p86_p6, %p83_p5 }
  0x90   :  { %91 = shalt.err (!%p88_p7)
}
  0x91   :  { %59 = dma.vmem_to_hbm [thread:$0]  %s57_s15, 256, %s136_s1, [#allocation1]  }
  0x92   :  { %92 = dma.done.wait [#allocation1], 256  }
  0x93   :  { %93 = vsyncadd [#allocation1], 4294967040 }
  0x94   :  { %61 = vsyncpa [#allocation1], 1 }

// kernel: base_extend_sam_forward.5
= control target key start
LH: loop header
LB: loop body
LE: loop exit
PB: predicated region body
PF: predicated region fallthrough
CT: control target
= control target key end

     0   :  { %v282_v6 = vmov 1966171168   ;;  %v64_v8 = vlaneseq  ;;  %vm16_vm0 = vcmask 254976   ;;  %v283_v26 = vmov 0.0   ;;  %s353_s1 = inlined_call_operand.vmem [shape: bf16[256,32], index: 1, kind: input, shape index: {}]   ;;  %s354_s0 = inlined_call_operand.vmem [shape: bf16[2,256], index: 0, kind: input, shape index: {}]   ;;  %s355_s2 = inlined_call_operand.vmem [shape: f32[2,32], index: 2, kind: output, shape index: {}]  }
   0x1   :  { %v266_v0 = vld [vmem:[%s353_s1 + $0x40] sm:$0xff]   ;;  %v268_v2 = vld [vmem:[%s353_s1 + $0x48] sm:$0xff]   ;;  %v270_v4 = vld [vmem:[%s353_s1 + $0x50] sm:$0xff]   ;;  %v62_v7 = vunpack.c.l.s4 %v282_v6  ;;  %17 = vst.msk [vmem:[#allocation2] sm:$0x3] %vm16_vm0, %v283_v26 }
   0x2   :  { %v267_v1 = vld [vmem:[%s353_s1] sm:$0xff]   ;;  %242 = vmatprep.subr.bf16.mxu0 %v266_v0  ;;  %v269_v3 = vld [vmem:[%s353_s1 + $0x8] sm:$0xff]   ;;  %v271_v5 = vld [vmem:[%s353_s1 + $0x10] sm:$0xff]   ;;  %v65_v12 = vshrl.u32 %v64_v8, 7 }
   0x3   :  { %243 = vmatpush3.bf16.msra.mxu0 %v267_v1  ;;  %v272_v9 = vld [vmem:[%s353_s1 + $0x58] sm:$0xff]   ;;  %v63_v11 = vunpack.c.0.s8 %v62_v7  ;;  %v274_v13 = vld [vmem:[%s353_s1 + $0x60] sm:$0xff]   ;;  %v276_v16 = vld [vmem:[%s353_s1 + $0x68] sm:$0xff]  }
   0x4   :  { %244 = vmatprep.subr.bf16.mxu0 %v268_v2  ;;  %v273_v10 = vld [vmem:[%s353_s1 + $0x18] sm:$0xff]   ;;  %v275_v14 = vld [vmem:[%s353_s1 + $0x20] sm:$0xff]   ;;  %v277_v19 = vld [vmem:[%s353_s1 + $0x28] sm:$0xff]  }
   0x5   :  { %v66_v15 = vsub.s32 %v63_v11, %v65_v12  ;;  %v225_v17 = vld.sshfl [vmem:[%s354_s0] sm:$0x11 pattern:$0x75316420]  ;;  %v278_v21 = vld [vmem:[%s353_s1 + $0x70] sm:$0xff]   ;;  %v280_v23 = vld [vmem:[%s353_s1 + $0x78] sm:$0xff]  }
   0x6   :  { %v60_v18 = vcombine.high %v225_v17, %v225_v17  ;;  %v279_v22 = vld [vmem:[%s353_s1 + $0x30] sm:$0xff]   ;;  %v281_v24 = vld [vmem:[%s353_s1 + $0x38] sm:$0xff]  }
   0x7   :  { %245 = vmatpush3.bf16.msra.mxu0 %v269_v3  ;;  %v67_v25 = vrot.slane %v225_v17, %v66_v15 }
   0x8   :  { %246 = vmatprep.subr.bf16.mxu0 %v270_v4  ;;  %v74_v20 = vrot.slane %v60_v18, %v66_v15  ;;  %v18_v28 = vld [vmem:[#allocation2] sm:$0x3] }
   0xa   :  { %205 = vmatprep.mubr.bf16.mxu0 %v74_v20 }
   0xb   :  { %247 = vmatpush3.bf16.msra.mxu0 %v271_v5 }
   0xc   :  { %248 = vmatprep.subr.bf16.mxu0 %v272_v9 }
   0xf   :  { %249 = vmatpush3.bf16.msra.mxu0 %v273_v10 }
  0x10   :  { %250 = vmatprep.subr.bf16.mxu0 %v274_v13 }
  0x13   :  { %251 = vmatpush3.bf16.msra.mxu0 %v275_v14 }
  0x14   :  { %252 = vmatprep.subr.bf16.mxu0 %v276_v16 }
  0x17   :  { %253 = vmatpush3.bf16.msra.mxu0 %v277_v19 }
  0x18   :  { %254 = vmatprep.subr.bf16.mxu0 %v278_v21 }
  0x1b   :  { %255 = vmatpush3.bf16.msra.mxu0 %v279_v22 }
  0x1c   :  { %256 = vmatprep.subr.bf16.mxu0 %v280_v23 }
  0x1f   :  { %257 = vmatpush3.bf16.msra.mxu0 %v281_v24 }
  0x22   :  { %206 = vmatmul.mubr.bf16.vlgmr.msra.gmra.mrb[0].mxu0 %v67_v25 }
  0xf5   :  { %v258_v27 = vpop.f32.mrb[0].mxu0 }
  0xf6   :  { %v259_v29 = vpop.f32.mrb[1].mxu0 }
  0xf7   :  { %v260_v30 = vadd.f32 %v259_v29, %v258_v27  ;;  %v261_v31 = vpop.f32.mrb[2].mxu0 }
  0xf8   :  { %v262_v32 = vpop.f32.mrb[3].mxu0 }
  0xf9   :  { %v213_v33 = vadd.f32 %v260_v30, %v18_v28 }
  0xfb   :  { %215 = vst.msk [vmem:[#allocation2] sm:$0x3] %vm16_vm0, %v213_v33 }
 0x102   :  { %v219_v34 = vld [vmem:[#allocation2] sm:$0x3] }
 0x103   :  { %220 = vst.msk [vmem:[%s355_s2] sm:$0x3] %vm16_vm0, %v219_v34 }

// kernel: base_extend_sam_forward.4
= control target key start
LH: loop header
LB: loop body
LE: loop exit
PB: predicated region body
PF: predicated region fallthrough
CT: control target
= control target key end

     0   :  { %vm885_vm0 = vcmask 130048   ;;  %vm333_vm1 = vcmask 261120   ;;  %vm2287_vm2 = vcmask 257024   ;;  %s4064_s4 = inlined_call_operand.vmem [shape: bf16[32,32], index: 4, kind: input, shape index: {}]   ;;  %s4065_s3 = inlined_call_operand.vmem [shape: bf16[16,32], index: 3, kind: input, shape index: {}]   ;;  %s4066_s0 = inlined_call_operand.vmem [shape: bf16[512,16], index: 0, kind: input, shape index: {}]   ;;  %s4067_s5 = inlined_call_operand.vmem [shape: bf16[32,32], index: 5, kind: input, shape index: {}]   ;;  %s4068_s1 = inlined_call_operand.vmem [shape: bf16[512,32], index: 1, kind: input, shape index: {}]   ;;  %s4069_s2 = inlined_call_operand.vmem [shape: bf16[512,32], index: 2, kind: input, shape index: {}]   ;;  %s4070_s6 = inlined_call_operand.vmem [shape: f32[1,32], index: 6, kind: input, shape index: {}]   ;;  %s4071_s7 = inlined_call_operand.vmem [shape: bf16[512,32], index: 7, kind: output, shape index: {}]  }
   0x1   :  { %v3115_v0 = vld [vmem:[%s4064_s4] sm:$0xff]   ;;  %v3118_v3 = vld [vmem:[%s4064_s4 + $0x8] sm:$0xff]   ;;  %v3123_v8 = vld [vmem:[%s4066_s0 + $0x10] sm:$0xff]  }
   0x2   :  { %v3116_v1 = vld [vmem:[%s4065_s3] sm:$0xff]   ;;  %2783 = vmatprep.subr.bf16.mxu1 %v3115_v0  ;;  %v3119_v4 = vld [vmem:[%s4066_s0 + $0x8] sm:$0xff]   ;;  %v3125_v9 = vld [vmem:[%s4068_s1 + $0x10] sm:$0xff]  }
   0x3   :  { %v3117_v2 = vld [vmem:[%s4066_s0] sm:$0xff]   ;;  %2851 = vmatprep.subr.bf16.mxu0 %v3116_v1  ;;  %2784 = vmatpush3.bf16.msra.mxu1 %v3115_v0  ;;  %v3122_v7 = vld [vmem:[%s4068_s1 + $0x8] sm:$0xff]   ;;  %v3124_v10 = vld [vmem:[%s4066_s0 + $0x18] sm:$0xff]  }
   0x4   :  { %2852 = vmatpush3.bf16.msra.mxu0 %v3116_v1  ;;  %2853 = vmatprep.mubr.msk.bf16.mxu0 %vm885_vm0, %v3117_v2  ;;  %v3120_v5 = vld [vmem:[%s4067_s5] sm:$0xff]   ;;  %v3126_v12 = vld [vmem:[%s4068_s1 + $0x18] sm:$0xff]   ;;  %v3128_v14 = vld [vmem:[%s4066_s0 + $0x28] sm:$0xff]  }
   0x5   :  { %2785 = vmatprep.subr.bf16.mxu1 %v3118_v3  ;;  %v3121_v6 = vld [vmem:[%s4068_s1] sm:$0xff]   ;;  %2917 = vmatprep.subr.bf16.mxu0 %v3120_v5  ;;  %v3131_v15 = vld [vmem:[%s4066_s0 + $0x30] sm:$0xff]   ;;  %v3130_v16 = vld [vmem:[%s4068_s1 + $0x28] sm:$0xff]  }
   0x6   :  { %2787 = vmatprep.mubr.msk.bf16.mxu1 %vm333_vm1, %v3121_v6  ;;  %v3127_v11 = vld [vmem:[%s4066_s0 + $0x20] sm:$0xff]   ;;  %v3133_v17 = vld [vmem:[%s4068_s1 + $0x30] sm:$0xff]   ;;  %v3139_v18 = vld [vmem:[%s4067_s5 + $0x8] sm:$0xff]  }
   0x7   :  { %2854 = vmatmul.mubr.msk.bf16.vlgmr.msra.gmra.mrb[0].mxu0 %vm885_vm0, %v3119_v4  ;;  %2786 = vmatpush3.bf16.msra.mxu1 %v3118_v3  ;;  %v3129_v13 = vld [vmem:[%s4068_s1 + $0x20] sm:$0xff]   ;;  %v3132_v19 = vld [vmem:[%s4066_s0 + $0x38] sm:$0xff]   ;;  %v3136_v23 = vld [vmem:[%s4066_s0 + $0x48] sm:$0xff]  }
   0x8   :  { %2918 = vmatpush3.bf16.msra.mxu0 %v3120_v5  ;;  %2985 = vmatprep.subr.bf16.mxu1 %v3116_v1  ;;  %v3135_v20 = vld [vmem:[%s4066_s0 + $0x40] sm:$0xff]   ;;  %v3134_v21 = vld [vmem:[%s4068_s1 + $0x38] sm:$0xff]   ;;  %v3140_v24 = vld [vmem:[%s4066_s0 + $0x50] sm:$0xff]  }
   0x9   :  { %2857 = vmatprep.mubr.msk.bf16.mxu0 %vm885_vm0, %v3123_v8  ;;  %2919 = vmatprep.subr.bf16.mxu0 %v3139_v18  ;;  %v3137_v22 = vld [vmem:[%s4068_s1 + $0x40] sm:$0xff]   ;;  %v3138_v25 = vld [vmem:[%s4068_s1 + $0x48] sm:$0xff]   ;;  %v3142_v26 = vld [vmem:[%s4068_s1 + $0x50] sm:$0xff]  }
   0xa   :  { %2788 = vmatmul.mubr.msk.bf16.vlgmr.msra.gmra.mrb[0].mxu1 %vm333_vm1, %v3122_v7  ;;  %v3141_v27 = vld [vmem:[%s4066_s0 + $0x58] sm:$0xff]   ;;  %v3144_v28 = vld [vmem:[%s4066_s0 + $0x60] sm:$0xff]   ;;  %v3145_v31 = vld [vmem:[%s4066_s0 + $0x68] sm:$0xff]  }
   0xb   :  { %2791 = vmatprep.mubr.msk.bf16.mxu1 %vm333_vm1, %v3125_v9  ;;  %2986 = vmatpush3.bf16.msra.mxu1 %v3116_v1  ;;  %v3143_v29 = vld [vmem:[%s4068_s1 + $0x58] sm:$0xff]   ;;  %v3146_v30 = vld [vmem:[%s4068_s1 + $0x60] sm:$0xff]   ;;  %v3148_v32 = vld [vmem:[%s4066_s0 + $0x70] sm:$0xff]  }
   0xc   :  { %2920 = vmatpush3.bf16.msra.mxu0 %v3139_v18  ;;  %v3147_v33 = vld [vmem:[%s4068_s1 + $0x68] sm:$0xff]   ;;  %v3150_v34 = vld [vmem:[%s4068_s1 + $0x70] sm:$0xff]   ;;  %v3149_v35 = vld [vmem:[%s4066_s0 + $0x78] sm:$0xff]  }
   0xd   :  { %v3152_v36 = vld [vmem:[%s4066_s0 + $0x80] sm:$0xff]   ;;  %v3151_v37 = vld [vmem:[%s4068_s1 + $0x78] sm:$0xff]   ;;  %v3153_v39 = vld [vmem:[%s4066_s0 + $0x88] sm:$0xff]  }
   0xe   :  { %v3154_v38 = vld [vmem:[%s4068_s1 + $0x80] sm:$0xff]   ;;  %v3155_v41 = vld [vmem:[%s4068_s1 + $0x88] sm:$0xff]   ;;  %v3158_v42 = vld [vmem:[%s4068_s1 + $0x90] sm:$0xff]  }
   0xf   :  { %2858 = vmatmul.mubr.msk.bf16.gmra.mrb[4].mxu0 %vm885_vm0, %v3124_v10  ;;  %v3156_v40 = vld [vmem:[%s4069_s2] sm:$0xff]   ;;  %v3157_v43 = vld [vmem:[%s4069_s2 + $0x8] sm:$0xff]   ;;  %v3160_v44 = vld [vmem:[%s4069_s2 + $0x10] sm:$0xff]  }
  0x10   :  { %2861 = vmatprep.mubr.msk.bf16.mxu0 %vm885_vm0, %v3127_v11  ;;  %v3159_v45 = vld [vmem:[%s4068_s1 + $0x98] sm:$0xff]   ;;  %v3162_v46 = vld [vmem:[%s4068_s1 + $0xa0] sm:$0xff]   ;;  %v3163_v49 = vld [vmem:[%s4068_s1 + $0xa8] sm:$0xff]  }
  0x11   :  { %v3161_v47 = vld [vmem:[%s4069_s2 + $0x18] sm:$0xff]   ;;  %v3164_v48 = vld [vmem:[%s4069_s2 + $0x20] sm:$0xff]   ;;  %v3166_v50 = vld [vmem:[%s4068_s1 + $0xb0] sm:$0xff]  }
  0x12   :  { %2792 = vmatmul.mubr.msk.bf16.gmra.mrb[4].mxu1 %vm333_vm1, %v3126_v12  ;;  %v3165_v51 = vld [vmem:[%s4069_s2 + $0x28] sm:$0xff]   ;;  %v3168_v52 = vld [vmem:[%s4069_s2 + $0x30] sm:$0xff]   ;;  %v3167_v53 = vld [vmem:[%s4068_s1 + $0xb8] sm:$0xff]  }
  0x13   :  { %2795 = vmatprep.mubr.msk.bf16.mxu1 %vm333_vm1, %v3129_v13  ;;  %v3170_v54 = vld [vmem:[%s4068_s1 + $0xc0] sm:$0xff]   ;;  %v3169_v55 = vld [vmem:[%s4069_s2 + $0x38] sm:$0xff]   ;;  %v3171_v57 = vld [vmem:[%s4068_s1 + $0xc8] sm:$0xff]  }
  0x14   :  { %v3172_v56 = vld [vmem:[%s4069_s2 + $0x40] sm:$0xff]   ;;  %v3174_v58 = vld [vmem:[%s4068_s1 + $0xd0] sm:$0xff]   ;;  %v3173_v59 = vld [vmem:[%s4069_s2 + $0x48] sm:$0xff]  }
  0x15   :  { %v3176_v60 = vld [vmem:[%s4069_s2 + $0x50] sm:$0xff]   ;;  %v3175_v61 = vld [vmem:[%s4068_s1 + $0xd8] sm:$0xff]   ;;  %v3178_v62 = vld [vmem:[%s4068_s1 + $0xe0] sm:$0xff]  }
  0x16   :  { %v3177_v63 = vld [vmem:[%s4069_s2 + $0x58] sm:$0xff]   ;;  %v3180_v0 = vld [vmem:[%s4069_s2 + $0x60] sm:$0xff]   ;;  %v3179_v1 = vld [vmem:[%s4068_s1 + $0xe8] sm:$0xff]  }
  0x17   :  { %2862 = vmatmul.mubr.msk.bf16.gmra.mrb[8].mxu0 %vm885_vm0, %v3128_v14  ;;  %v3182_v2 = vld [vmem:[%s4068_s1 + $0xf0] sm:$0xff]   ;;  %v3181_v3 = vld [vmem:[%s4069_s2 + $0x68] sm:$0xff]   ;;  %v3183_v5 = vld [vmem:[%s4068_s1 + $0xf8] sm:$0xff]  }
  0x18   :  { %2865 = vmatprep.mubr.msk.bf16.mxu0 %vm885_vm0, %v3131_v15  ;;  %v3184_v4 = vld [vmem:[%s4069_s2 + $0x70] sm:$0xff]   ;;  %v3185_v7 = vld [vmem:[%s4069_s2 + $0x78] sm:$0xff]   ;;  %v3188_v8 = vld [vmem:[%s4069_s2 + $0x80] sm:$0xff]  }
  0x19   :  { %v3186_v6 = vld [vmem:[%s4066_s0 + $0x90] sm:$0xff]   ;;  %v3187_v9 = vld [vmem:[%s4066_s0 + $0x98] sm:$0xff]   ;;  %v3190_v10 = vld [vmem:[%s4066_s0 + $0xa0] sm:$0xff]  }
  0x1a   :  { %2796 = vmatmul.mubr.msk.bf16.gmra.mrb[8].mxu1 %vm333_vm1, %v3130_v16  ;;  %v3189_v11 = vld [vmem:[%s4069_s2 + $0x88] sm:$0xff]   ;;  %v3192_v12 = vld [vmem:[%s4069_s2 + $0x90] sm:$0xff]   ;;  %v3193_v15 = vld [vmem:[%s4069_s2 + $0x98] sm:$0xff]  }
  0x1b   :  { %2799 = vmatprep.mubr.msk.bf16.mxu1 %vm333_vm1, %v3133_v17  ;;  %v3191_v13 = vld [vmem:[%s4066_s0 + $0xa8] sm:$0xff]   ;;  %v3194_v14 = vld [vmem:[%s4066_s0 + $0xb0] sm:$0xff]   ;;  %v3196_v16 = vld [vmem:[%s4069_s2 + $0xa0] sm:$0xff]  }
  0x1c   :  { %v3195_v17 = vld [vmem:[%s4066_s0 + $0xb8] sm:$0xff]   ;;  %v3198_v18 = vld [vmem:[%s4066_s0 + $0xc0] sm:$0xff]  }
  0x1f   :  { %2866 = vmatmul.mubr.msk.bf16.gmra.mrb[12].mxu0 %vm885_vm0, %v3132_v19  ;;  %v3197_v19 = vld [vmem:[%s4069_s2 + $0xa8] sm:$0xff]  }
  0x20   :  { %2869 = vmatprep.mubr.msk.bf16.mxu0 %vm885_vm0, %v3135_v20  ;;  %v3200_v20 = vld [vmem:[%s4069_s2 + $0xb0] sm:$0xff]  }
  0x22   :  { %2800 = vmatmul.mubr.msk.bf16.gmra.mrb[12].mxu1 %vm333_vm1, %v3134_v21  ;;  %v3199_v21 = vld [vmem:[%s4066_s0 + $0xc8] sm:$0xff]  }
  0x23   :  { %2803 = vmatprep.mubr.msk.bf16.mxu1 %vm333_vm1, %v3137_v22  ;;  %v3202_v22 = vld [vmem:[%s4066_s0 + $0xd0] sm:$0xff]  }
  0x27   :  { %2870 = vmatmul.mubr.msk.bf16.gmra.mrb[16].mxu0 %vm885_vm0, %v3136_v23  ;;  %v3201_v23 = vld [vmem:[%s4069_s2 + $0xb8] sm:$0xff]  }
  0x28   :  { %2873 = vmatprep.mubr.msk.bf16.mxu0 %vm885_vm0, %v3140_v24  ;;  %v3204_v24 = vld [vmem:[%s4069_s2 + $0xc0] sm:$0xff]  }
  0x2a   :  { %2804 = vmatmul.mubr.msk.bf16.gmra.mrb[16].mxu1 %vm333_vm1, %v3138_v25  ;;  %v3203_v25 = vld [vmem:[%s4066_s0 + $0xd8] sm:$0xff]  }
  0x2b   :  { %2807 = vmatprep.mubr.msk.bf16.mxu1 %vm333_vm1, %v3142_v26  ;;  %v3206_v26 = vld [vmem:[%s4066_s0 + $0xe0] sm:$0xff]  }
  0x2f   :  { %2874 = vmatmul.mubr.msk.bf16.gmra.mrb[20].mxu0 %vm885_vm0, %v3141_v27  ;;  %v3205_v27 = vld [vmem:[%s4069_s2 + $0xc8] sm:$0xff]  }
  0x30   :  { %2877 = vmatprep.mubr.msk.bf16.mxu0 %vm885_vm0, %v3144_v28  ;;  %v3208_v28 = vld [vmem:[%s4069_s2 + $0xd0] sm:$0xff]  }
  0x32   :  { %2808 = vmatmul.mubr.msk.bf16.gmra.mrb[20].mxu1 %vm333_vm1, %v3143_v29  ;;  %v3207_v29 = vld [vmem:[%s4066_s0 + $0xe8] sm:$0xff]  }
  0x33   :  { %2811 = vmatprep.mubr.msk.bf16.mxu1 %vm333_vm1, %v3146_v30  ;;  %v3210_v30 = vld [vmem:[%s4066_s0 + $0xf0] sm:$0xff]  }
  0x37   :  { %2878 = vmatmul.mubr.msk.bf16.gmra.mrb[24].mxu0 %vm885_vm0, %v3145_v31  ;;  %v3209_v31 = vld [vmem:[%s4069_s2 + $0xd8] sm:$0xff]  }
  0x38   :  { %2881 = vmatprep.mubr.msk.bf16.mxu0 %vm885_vm0, %v3148_v32  ;;  %v3212_v32 = vld [vmem:[%s4069_s2 + $0xe0] sm:$0xff]  }
  0x3a   :  { %2812 = vmatmul.mubr.msk.bf16.gmra.mrb[24].mxu1 %vm333_vm1, %v3147_v33  ;;  %v3211_v33 = vld [vmem:[%s4066_s0 + $0xf8] sm:$0xff]  }
  0x3b   :  { %2815 = vmatprep.mubr.msk.bf16.mxu1 %vm333_vm1, %v3150_v34  ;;  %v3213_v34 = vld [vmem:[%s4069_s2 + $0xe8] sm:$0xff]  }
  0x3f   :  { %2882 = vmatmul.mubr.msk.bf16.gmra.mrb[28].mxu0 %vm885_vm0, %v3149_v35  ;;  %v3214_v35 = vld [vmem:[%s4069_s2 + $0xf0] sm:$0xff]  }
  0x40   :  { %2885 = vmatprep.mubr.msk.bf16.mxu0 %vm885_vm0, %v3152_v36  ;;  %v3215_v36 = vld [vmem:[%s4069_s2 + $0xf8] sm:$0xff]  }
  0x42   :  { %2816 = vmatmul.mubr.msk.bf16.gmra.mrb[28].mxu1 %vm333_vm1, %v3151_v37 }
  0x43   :  { %2819 = vmatprep.mubr.msk.bf16.mxu1 %vm333_vm1, %v3154_v38 }
  0x47   :  { %2886 = vmatmul.mubr.msk.bf16.gmra.mrb[32].mxu0 %vm885_vm0, %v3153_v39 }
  0x48   :  { %2921 = vmatprep.mubr.msk.bf16.mxu0 %vm333_vm1, %v3156_v40 }
  0x4a   :  { %2820 = vmatmul.mubr.msk.bf16.gmra.mrb[32].mxu1 %vm333_vm1, %v3155_v41 }
  0x4b   :  { %2823 = vmatprep.mubr.msk.bf16.mxu1 %vm333_vm1, %v3158_v42 }
  0x4f   :  { %2922 = vmatmul.mubr.msk.bf16.vlgmr.msra.gmra.mrb[0].mxu0 %vm333_vm1, %v3157_v43 }
  0x50   :  { %2925 = vmatprep.mubr.msk.bf16.mxu0 %vm333_vm1, %v3160_v44 }
  0x52   :  { %2824 = vmatmul.mubr.msk.bf16.gmra.mrb[36].mxu1 %vm333_vm1, %v3159_v45 }
  0x53   :  { %2827 = vmatprep.mubr.msk.bf16.mxu1 %vm333_vm1, %v3162_v46 }
  0x57   :  { %2926 = vmatmul.mubr.msk.bf16.gmra.mrb[4].mxu0 %vm333_vm1, %v3161_v47 }
  0x58   :  { %2929 = vmatprep.mubr.msk.bf16.mxu0 %vm333_vm1, %v3164_v48 }
  0x5a   :  { %2828 = vmatmul.mubr.msk.bf16.gmra.mrb[40].mxu1 %vm333_vm1, %v3163_v49 }
  0x5b   :  { %2831 = vmatprep.mubr.msk.bf16.mxu1 %vm333_vm1, %v3166_v50 }
  0x5f   :  { %2930 = vmatmul.mubr.msk.bf16.gmra.mrb[8].mxu0 %vm333_vm1, %v3165_v51 }
  0x60   :  { %2933 = vmatprep.mubr.msk.bf16.mxu0 %vm333_vm1, %v3168_v52 }
  0x62   :  { %2832 = vmatmul.mubr.msk.bf16.gmra.mrb[44].mxu1 %vm333_vm1, %v3167_v53 }
  0x63   :  { %2835 = vmatprep.mubr.msk.bf16.mxu1 %vm333_vm1, %v3170_v54 }
  0x67   :  { %2934 = vmatmul.mubr.msk.bf16.gmra.mrb[12].mxu0 %vm333_vm1, %v3169_v55 }
  0x68   :  { %2937 = vmatprep.mubr.msk.bf16.mxu0 %vm333_vm1, %v3172_v56 }
  0x6a   :  { %2836 = vmatmul.mubr.msk.bf16.gmra.mrb[48].mxu1 %vm333_vm1, %v3171_v57 }
  0x6b   :  { %2839 = vmatprep.mubr.msk.bf16.mxu1 %vm333_vm1, %v3174_v58 }
  0x6f   :  { %2938 = vmatmul.mubr.msk.bf16.gmra.mrb[16].mxu0 %vm333_vm1, %v3173_v59 }
  0x70   :  { %2941 = vmatprep.mubr.msk.bf16.mxu0 %vm333_vm1, %v3176_v60 }
  0x72   :  { %2840 = vmatmul.mubr.msk.bf16.gmra.mrb[52].mxu1 %vm333_vm1, %v3175_v61 }
  0x73   :  { %2843 = vmatprep.mubr.msk.bf16.mxu1 %vm333_vm1, %v3178_v62 }
  0x77   :  { %2942 = vmatmul.mubr.msk.bf16.gmra.mrb[20].mxu0 %vm333_vm1, %v3177_v63 }
  0x78   :  { %2945 = vmatprep.mubr.msk.bf16.mxu0 %vm333_vm1, %v3180_v0 }
  0x7a   :  { %2844 = vmatmul.mubr.msk.bf16.gmra.mrb[56].mxu1 %vm333_vm1, %v3179_v1 }
  0x7b   :  { %2847 = vmatprep.mubr.msk.bf16.mxu1 %vm333_vm1, %v3182_v2 }
  0x7f   :  { %2946 = vmatmul.mubr.msk.bf16.gmra.mrb[24].mxu0 %vm333_vm1, %v3181_v3 }
  0x80   :  { %2949 = vmatprep.mubr.msk.bf16.mxu0 %vm333_vm1, %v3184_v4 }
  0x82   :  { %2848 = vmatmul.mubr.msk.bf16.gmra.mrb[60].mxu1 %vm333_vm1, %v3183_v5 }
  0x83   :  { %2889 = vmatprep.mubr.msk.bf16.mxu1 %vm885_vm0, %v3186_v6 }
  0x87   :  { %2950 = vmatmul.mubr.msk.bf16.gmra.mrb[28].mxu0 %vm333_vm1, %v3185_v7 }
  0x88   :  { %2953 = vmatprep.mubr.msk.bf16.mxu0 %vm333_vm1, %v3188_v8 }
  0x8a   :  { %2890 = vmatmul.mubr.msk.bf16.vlgmr.msra.gmra.mrb[36].mxu1 %vm885_vm0, %v3187_v9 }
  0x8b   :  { %2893 = vmatprep.mubr.msk.bf16.mxu1 %vm885_vm0, %v3190_v10  ;;  %v3714_v10 = vld [vmem:[%s4070_s6] ss:$0 sm:$0xff] }
  0x8f   :  { %2954 = vmatmul.mubr.msk.bf16.gmra.mrb[32].mxu0 %vm333_vm1, %v3189_v11 }
  0x90   :  { %2957 = vmatprep.mubr.msk.bf16.mxu0 %vm333_vm1, %v3192_v12 }
  0x92   :  { %2894 = vmatmul.mubr.msk.bf16.gmra.mrb[40].mxu1 %vm885_vm0, %v3191_v13 }
  0x93   :  { %2897 = vmatprep.mubr.msk.bf16.mxu1 %vm885_vm0, %v3194_v14 }
  0x97   :  { %2958 = vmatmul.mubr.msk.bf16.gmra.mrb[36].mxu0 %vm333_vm1, %v3193_v15 }
  0x98   :  { %2961 = vmatprep.mubr.msk.bf16.mxu0 %vm333_vm1, %v3196_v16 }
  0x9a   :  { %2898 = vmatmul.mubr.msk.bf16.gmra.mrb[44].mxu1 %vm885_vm0, %v3195_v17 }
  0x9b   :  { %2901 = vmatprep.mubr.msk.bf16.mxu1 %vm885_vm0, %v3198_v18 }
  0x9f   :  { %2962 = vmatmul.mubr.msk.bf16.gmra.mrb[40].mxu0 %vm333_vm1, %v3197_v19 }
  0xa0   :  { %2965 = vmatprep.mubr.msk.bf16.mxu0 %vm333_vm1, %v3200_v20 }
  0xa2   :  { %2902 = vmatmul.mubr.msk.bf16.gmra.mrb[48].mxu1 %vm885_vm0, %v3199_v21 }
  0xa3   :  { %2905 = vmatprep.mubr.msk.bf16.mxu1 %vm885_vm0, %v3202_v22 }
  0xa7   :  { %2966 = vmatmul.mubr.msk.bf16.gmra.mrb[44].mxu0 %vm333_vm1, %v3201_v23 }
  0xa8   :  { %2969 = vmatprep.mubr.msk.bf16.mxu0 %vm333_vm1, %v3204_v24 }
  0xaa   :  { %2906 = vmatmul.mubr.msk.bf16.gmra.mrb[52].mxu1 %vm885_vm0, %v3203_v25 }
  0xab   :  { %2909 = vmatprep.mubr.msk.bf16.mxu1 %vm885_vm0, %v3206_v26 }
  0xaf   :  { %2970 = vmatmul.mubr.msk.bf16.gmra.mrb[48].mxu0 %vm333_vm1, %v3205_v27 }
  0xb0   :  { %2973 = vmatprep.mubr.msk.bf16.mxu0 %vm333_vm1, %v3208_v28 }
  0xb2   :  { %2910 = vmatmul.mubr.msk.bf16.gmra.mrb[56].mxu1 %vm885_vm0, %v3207_v29 }
  0xb3   :  { %2913 = vmatprep.mubr.msk.bf16.mxu1 %vm885_vm0, %v3210_v30 }
  0xb7   :  { %2974 = vmatmul.mubr.msk.bf16.gmra.mrb[52].mxu0 %vm333_vm1, %v3209_v31 }
  0xb8   :  { %2977 = vmatprep.mubr.msk.bf16.mxu0 %vm333_vm1, %v3212_v32 }
  0xba   :  { %2914 = vmatmul.mubr.msk.bf16.gmra.mrb[60].mxu1 %vm885_vm0, %v3211_v33 }
  0xbf   :  { %2978 = vmatmul.mubr.msk.bf16.gmra.mrb[56].mxu0 %vm333_vm1, %v3213_v34 }
  0xc0   :  { %2981 = vmatprep.mubr.msk.bf16.mxu0 %vm333_vm1, %v3214_v35 }
  0xc7   :  { %2982 = vmatmul.mubr.msk.bf16.gmra.mrb[60].mxu0 %vm333_vm1, %v3215_v36 }
  0xdd   :  { %v2789_v37 = vpop.f32.mrb[0].mxu1 }
  0xde   :  { %v464_v38 = vpop.f32.mrb[1].mxu1 }
  0xdf   :  { %v2790_v39 = vpop.f32.mrb[2].mxu1 }
  0xe0   :  { %v467_v40 = vpop.f32.mrb[3].mxu1 }
  0xe5   :  { %v2793_v41 = vpop.f32.mrb[4].mxu1 }
  0xe6   :  { %v480_v42 = vpop.f32.mrb[5].mxu1 }
  0xe7   :  { %v2794_v43 = vpop.f32.mrb[6].mxu1 }
  0xe8   :  { %v483_v44 = vpop.f32.mrb[7].mxu1 }
  0xed   :  { %v3655_v45 = vpop.f32.mrb[8].mxu1 }
  0xee   :  { %v3657_v46 = vpop.f32.mrb[9].mxu1 }
  0xef   :  { %v3659_v47 = vpop.f32.mrb[10].mxu1 }
  0xf0   :  { %v3661_v48 = vpop.f32.mrb[11].mxu1 }
  0xf5   :  { %v3663_v49 = vpop.f32.mrb[12].mxu1 }
  0xf6   :  { %v3665_v50 = vpop.f32.mrb[13].mxu1 }
  0xf7   :  { %v3667_v51 = vpop.f32.mrb[14].mxu1 }
  0xf8   :  { %v3669_v52 = vpop.f32.mrb[15].mxu1 }
  0xfd   :  { %v3671_v53 = vpop.f32.mrb[16].mxu1 }
  0xfe   :  { %v3673_v54 = vpop.f32.mrb[17].mxu1 }
  0xff   :  { %v3675_v55 = vpop.f32.mrb[18].mxu1 }
 0x100   :  { %v3677_v56 = vpop.f32.mrb[19].mxu1 }
 0x105   :  { %v3679_v57 = vpop.f32.mrb[20].mxu1 }
 0x106   :  { %v3681_v58 = vpop.f32.mrb[21].mxu1 }
 0x107   :  { %v3683_v59 = vpop.f32.mrb[22].mxu1 }
 0x108   :  { %v3685_v60 = vpop.f32.mrb[23].mxu1 }
 0x10d   :  { %v3687_v61 = vpop.f32.mrb[24].mxu1 }
 0x10e   :  { %v3689_v62 = vpop.f32.mrb[25].mxu1 }
 0x10f   :  { %v3691_v63 = vpop.f32.mrb[26].mxu1 }
 0x110   :  { %v3693_v0 = vpop.f32.mrb[27].mxu1 }
 0x115   :  { %v3695_v1 = vpop.f32.mrb[28].mxu1 }
 0x116   :  { %v3697_v2 = vpop.f32.mrb[29].mxu1 }
 0x117   :  { %v3699_v3 = vpop.f32.mrb[30].mxu1 }
 0x118   :  { %v3701_v4 = vpop.f32.mrb[31].mxu1 }
 0x11d   :  { %v3703_v5 = vpop.f32.mrb[32].mxu1 }
 0x11e   :  { %v3705_v6 = vpop.f32.mrb[33].mxu1 }
 0x11f   :  { %v3707_v7 = vpop.f32.mrb[34].mxu1 }
 0x120   :  { %v3709_v8 = vpop.f32.mrb[35].mxu1 }
 0x122   :  { %v2923_v9 = vpop.f32.mrb[0].mxu0 }
 0x123   :  { %v2987_v11 = vadd.f32 %v2923_v9, %v2789_v37  ;;  %v1641_v12 = vpop.f32.mrb[1].mxu0 }
 0x124   :  { %v2988_v13 = vadd.f32 %v1641_v12, %v464_v38  ;;  %v2924_v14 = vpop.f32.mrb[2].mxu0 }
 0x125   :  { %v1969_v15 = vadd.f32 %v2987_v11, %v3714_v10  ;;  %v2989_v16 = vadd.f32 %v2924_v14, %v2790_v39  ;;  %v1644_v17 = vpop.f32.mrb[3].mxu0 }
 0x126   :  { %v1967_v18 = vadd.f32 %v2988_v13, %v3714_v10  ;;  %v2990_v19 = vadd.f32 %v1644_v17, %v467_v40 }
 0x127   :  { %v2620_v20 = vpack.c.bf16 %v1969_v15, %v1969_v15  ;;  %v1970_v21 = vadd.f32 %v2989_v16, %v3714_v10 }
 0x128   :  { %v2618_v22 = vpack.c.bf16 %v1967_v18, %v1967_v18  ;;  %v1968_v23 = vadd.f32 %v2990_v19, %v3714_v10 }
 0x129   :  { %2290 = vst.msk [vmem:[%s4071_s7 + $0x8] sm:$0xf] %vm2287_vm2, %v2620_v20  ;;  %v2621_v24 = vpack.c.bf16 %v1970_v21, %v1970_v21 }
 0x12a   :  { %2288 = vst.msk [vmem:[%s4071_s7] sm:$0xf] %vm2287_vm2, %v2618_v22  ;;  %v2619_v25 = vpack.c.bf16 %v1968_v23, %v1968_v23  ;;  %v2927_v26 = vpop.f32.mrb[4].mxu0 }
 0x12b   :  { %2291 = vst.msk [vmem:[%s4071_s7 + $0xc] sm:$0xf] %vm2287_vm2, %v2621_v24  ;;  %v2991_v27 = vadd.f32 %v2927_v26, %v2793_v41  ;;  %v1657_v28 = vpop.f32.mrb[5].mxu0 }
 0x12c   :  { %2289 = vst.msk [vmem:[%s4071_s7 + $0x4] sm:$0xf] %vm2287_vm2, %v2619_v25  ;;  %v2992_v29 = vadd.f32 %v1657_v28, %v480_v42  ;;  %v2928_v30 = vpop.f32.mrb[6].mxu0 }
 0x12d   :  { %v1973_v31 = vadd.f32 %v2991_v27, %v3714_v10  ;;  %v2993_v32 = vadd.f32 %v2928_v30, %v2794_v43  ;;  %v1660_v33 = vpop.f32.mrb[7].mxu0 }
 0x12e   :  { %v1971_v34 = vadd.f32 %v2992_v29, %v3714_v10  ;;  %v2994_v35 = vadd.f32 %v1660_v33, %v483_v44 }
 0x12f   :  { %v2624_v36 = vpack.c.bf16 %v1973_v31, %v1973_v31  ;;  %v1974_v37 = vadd.f32 %v2993_v32, %v3714_v10 }
 0x130   :  { %v2622_v38 = vpack.c.bf16 %v1971_v34, %v1971_v34  ;;  %v1972_v39 = vadd.f32 %v2994_v35, %v3714_v10 }
 0x131   :  { %2294 = vst.msk [vmem:[%s4071_s7 + $0x18] sm:$0xf] %vm2287_vm2, %v2624_v36  ;;  %v2625_v40 = vpack.c.bf16 %v1974_v37, %v1974_v37 }
 0x132   :  { %2292 = vst.msk [vmem:[%s4071_s7 + $0x10] sm:$0xf] %vm2287_vm2, %v2622_v38  ;;  %v2623_v41 = vpack.c.bf16 %v1972_v39, %v1972_v39  ;;  %v2931_v42 = vpop.f32.mrb[8].mxu0 }
 0x133   :  { %2295 = vst.msk [vmem:[%s4071_s7 + $0x1c] sm:$0xf] %vm2287_vm2, %v2625_v40  ;;  %v2995_v43 = vadd.f32 %v2931_v42, %v3655_v45  ;;  %v1673_v44 = vpop.f32.mrb[9].mxu0 }
 0x134   :  { %2293 = vst.msk [vmem:[%s4071_s7 + $0x14] sm:$0xf] %vm2287_vm2, %v2623_v41  ;;  %v2996_v9 = vadd.f32 %v1673_v44, %v3657_v46  ;;  %v2932_v11 = vpop.f32.mrb[10].mxu0 }
 0x135   :  { %v1977_v12 = vadd.f32 %v2995_v43, %v3714_v10  ;;  %v2997_v13 = vadd.f32 %v2932_v11, %v3659_v47  ;;  %v1676_v14 = vpop.f32.mrb[11].mxu0 }
 0x136   :  { %v1975_v15 = vadd.f32 %v2996_v9, %v3714_v10  ;;  %v2998_v16 = vadd.f32 %v1676_v14, %v3661_v48 }
 0x137   :  { %v2628_v17 = vpack.c.bf16 %v1977_v12, %v1977_v12  ;;  %v1978_v45 = vadd.f32 %v2997_v13, %v3714_v10 }
 0x138   :  { %v2626_v18 = vpack.c.bf16 %v1975_v15, %v1975_v15  ;;  %v1976_v19 = vadd.f32 %v2998_v16, %v3714_v10 }
 0x139   :  { %2298 = vst.msk [vmem:[%s4071_s7 + $0x28] sm:$0xf] %vm2287_vm2, %v2628_v17  ;;  %v2629_v46 = vpack.c.bf16 %v1978_v45, %v1978_v45 }
 0x13a   :  { %2296 = vst.msk [vmem:[%s4071_s7 + $0x20] sm:$0xf] %vm2287_vm2, %v2626_v18  ;;  %v2627_v47 = vpack.c.bf16 %v1976_v19, %v1976_v19  ;;  %v2935_v20 = vpop.f32.mrb[12].mxu0 }
 0x13b   :  { %2299 = vst.msk [vmem:[%s4071_s7 + $0x2c] sm:$0xf] %vm2287_vm2, %v2629_v46  ;;  %v2999_v48 = vadd.f32 %v2935_v20, %v3663_v49  ;;  %v1689_v21 = vpop.f32.mrb[13].mxu0 }
 0x13c   :  { %2297 = vst.msk [vmem:[%s4071_s7 + $0x24] sm:$0xf] %vm2287_vm2, %v2627_v47  ;;  %v3000_v22 = vadd.f32 %v1689_v21, %v3665_v50  ;;  %v2936_v23 = vpop.f32.mrb[14].mxu0 }
 0x13d   :  { %v1981_v24 = vadd.f32 %v2999_v48, %v3714_v10  ;;  %v3001_v25 = vadd.f32 %v2936_v23, %v3667_v51  ;;  %v1692_v26 = vpop.f32.mrb[15].mxu0 }
 0x13e   :  { %v1979_v27 = vadd.f32 %v3000_v22, %v3714_v10  ;;  %v3002_v28 = vadd.f32 %v1692_v26, %v3669_v52 }
 0x13f   :  { %v2632_v29 = vpack.c.bf16 %v1981_v24, %v1981_v24  ;;  %v1982_v49 = vadd.f32 %v3001_v25, %v3714_v10 }
 0x140   :  { %v2630_v30 = vpack.c.bf16 %v1979_v27, %v1979_v27  ;;  %v1980_v31 = vadd.f32 %v3002_v28, %v3714_v10 }
 0x141   :  { %2302 = vst.msk [vmem:[%s4071_s7 + $0x38] sm:$0xf] %vm2287_vm2, %v2632_v29  ;;  %v2633_v50 = vpack.c.bf16 %v1982_v49, %v1982_v49 }
 0x142   :  { %2300 = vst.msk [vmem:[%s4071_s7 + $0x30] sm:$0xf] %vm2287_vm2, %v2630_v30  ;;  %v2631_v51 = vpack.c.bf16 %v1980_v31, %v1980_v31  ;;  %v2939_v32 = vpop.f32.mrb[16].mxu0 }
 0x143   :  { %2303 = vst.msk [vmem:[%s4071_s7 + $0x3c] sm:$0xf] %vm2287_vm2, %v2633_v50  ;;  %v3003_v52 = vadd.f32 %v2939_v32, %v3671_v53  ;;  %v1705_v33 = vpop.f32.mrb[17].mxu0 }
 0x144   :  { %2301 = vst.msk [vmem:[%s4071_s7 + $0x34] sm:$0xf] %vm2287_vm2, %v2631_v51  ;;  %v3004_v34 = vadd.f32 %v1705_v33, %v3673_v54  ;;  %v2940_v35 = vpop.f32.mrb[18].mxu0 }
 0x145   :  { %v1985_v36 = vadd.f32 %v3003_v52, %v3714_v10  ;;  %v3005_v37 = vadd.f32 %v2940_v35, %v3675_v55  ;;  %v1708_v38 = vpop.f32.mrb[19].mxu0 }
 0x146   :  { %v1983_v39 = vadd.f32 %v3004_v34, %v3714_v10  ;;  %v3006_v40 = vadd.f32 %v1708_v38, %v3677_v56 }
 0x147   :  { %v2636_v41 = vpack.c.bf16 %v1985_v36, %v1985_v36  ;;  %v1986_v53 = vadd.f32 %v3005_v37, %v3714_v10 }
 0x148   :  { %v2634_v42 = vpack.c.bf16 %v1983_v39, %v1983_v39  ;;  %v1984_v43 = vadd.f32 %v3006_v40, %v3714_v10 }
 0x149   :  { %2306 = vst.msk [vmem:[%s4071_s7 + $0x48] sm:$0xf] %vm2287_vm2, %v2636_v41  ;;  %v2637_v54 = vpack.c.bf16 %v1986_v53, %v1986_v53 }
 0x14a   :  { %2304 = vst.msk [vmem:[%s4071_s7 + $0x40] sm:$0xf] %vm2287_vm2, %v2634_v42  ;;  %v2635_v55 = vpack.c.bf16 %v1984_v43, %v1984_v43  ;;  %v2943_v44 = vpop.f32.mrb[20].mxu0 }
 0x14b   :  { %2307 = vst.msk [vmem:[%s4071_s7 + $0x4c] sm:$0xf] %vm2287_vm2, %v2637_v54  ;;  %v3007_v56 = vadd.f32 %v2943_v44, %v3679_v57  ;;  %v1721_v9 = vpop.f32.mrb[21].mxu0 }
 0x14c   :  { %2305 = vst.msk [vmem:[%s4071_s7 + $0x44] sm:$0xf] %vm2287_vm2, %v2635_v55  ;;  %v3008_v11 = vadd.f32 %v1721_v9, %v3681_v58  ;;  %v2944_v12 = vpop.f32.mrb[22].mxu0 }
 0x14d   :  { %v1989_v13 = vadd.f32 %v3007_v56, %v3714_v10  ;;  %v3009_v14 = vadd.f32 %v2944_v12, %v3683_v59  ;;  %v1724_v15 = vpop.f32.mrb[23].mxu0 }
 0x14e   :  { %v1987_v16 = vadd.f32 %v3008_v11, %v3714_v10  ;;  %v3010_v17 = vadd.f32 %v1724_v15, %v3685_v60 }
 0x14f   :  { %v2640_v45 = vpack.c.bf16 %v1989_v13, %v1989_v13  ;;  %v1990_v57 = vadd.f32 %v3009_v14, %v3714_v10 }
 0x150   :  { %v2638_v18 = vpack.c.bf16 %v1987_v16, %v1987_v16  ;;  %v1988_v19 = vadd.f32 %v3010_v17, %v3714_v10 }
 0x151   :  { %2310 = vst.msk [vmem:[%s4071_s7 + $0x58] sm:$0xf] %vm2287_vm2, %v2640_v45  ;;  %v2641_v58 = vpack.c.bf16 %v1990_v57, %v1990_v57 }
 0x152   :  { %2308 = vst.msk [vmem:[%s4071_s7 + $0x50] sm:$0xf] %vm2287_vm2, %v2638_v18  ;;  %v2639_v59 = vpack.c.bf16 %v1988_v19, %v1988_v19  ;;  %v2947_v46 = vpop.f32.mrb[24].mxu0 }
 0x153   :  { %2311 = vst.msk [vmem:[%s4071_s7 + $0x5c] sm:$0xf] %vm2287_vm2, %v2641_v58  ;;  %v3011_v60 = vadd.f32 %v2947_v46, %v3687_v61  ;;  %v1737_v47 = vpop.f32.mrb[25].mxu0 }
 0x154   :  { %2309 = vst.msk [vmem:[%s4071_s7 + $0x54] sm:$0xf] %vm2287_vm2, %v2639_v59  ;;  %v3012_v20 = vadd.f32 %v1737_v47, %v3689_v62  ;;  %v2948_v48 = vpop.f32.mrb[26].mxu0 }
 0x155   :  { %v1993_v21 = vadd.f32 %v3011_v60, %v3714_v10  ;;  %v3013_v22 = vadd.f32 %v2948_v48, %v3691_v63  ;;  %v1740_v23 = vpop.f32.mrb[27].mxu0 }
 0x156   :  { %v1991_v24 = vadd.f32 %v3012_v20, %v3714_v10  ;;  %v3014_v25 = vadd.f32 %v1740_v23, %v3693_v0 }
 0x157   :  { %v2644_v26 = vpack.c.bf16 %v1993_v21, %v1993_v21  ;;  %v1994_v61 = vadd.f32 %v3013_v22, %v3714_v10 }
 0x158   :  { %v2642_v27 = vpack.c.bf16 %v1991_v24, %v1991_v24  ;;  %v1992_v28 = vadd.f32 %v3014_v25, %v3714_v10 }
 0x159   :  { %2314 = vst.msk [vmem:[%s4071_s7 + $0x68] sm:$0xf] %vm2287_vm2, %v2644_v26  ;;  %v2645_v62 = vpack.c.bf16 %v1994_v61, %v1994_v61 }
 0x15a   :  { %2312 = vst.msk [vmem:[%s4071_s7 + $0x60] sm:$0xf] %vm2287_vm2, %v2642_v27  ;;  %v2643_v63 = vpack.c.bf16 %v1992_v28, %v1992_v28  ;;  %v2951_v29 = vpop.f32.mrb[28].mxu0 }
 0x15b   :  { %2315 = vst.msk [vmem:[%s4071_s7 + $0x6c] sm:$0xf] %vm2287_vm2, %v2645_v62  ;;  %v3015_v0 = vadd.f32 %v2951_v29, %v3695_v1  ;;  %v1753_v49 = vpop.f32.mrb[29].mxu0 }
 0x15c   :  { %2313 = vst.msk [vmem:[%s4071_s7 + $0x64] sm:$0xf] %vm2287_vm2, %v2643_v63  ;;  %v3016_v30 = vadd.f32 %v1753_v49, %v3697_v2  ;;  %v2952_v31 = vpop.f32.mrb[30].mxu0 }
 0x15d   :  { %v1997_v50 = vadd.f32 %v3015_v0, %v3714_v10  ;;  %v3017_v51 = vadd.f32 %v2952_v31, %v3699_v3  ;;  %v1756_v32 = vpop.f32.mrb[31].mxu0  ;;  %v2891_v34 = vpop.f32.mrb[36].mxu1 }
 0x15e   :  { %v1995_v52 = vadd.f32 %v3016_v30, %v3714_v10  ;;  %v3018_v33 = vadd.f32 %v1756_v32, %v3701_v4  ;;  %v1160_v36 = vpop.f32.mrb[37].mxu1 }
 0x15f   :  { %v2648_v1 = vpack.c.bf16 %v1997_v50, %v1997_v50  ;;  %v1998_v35 = vadd.f32 %v3017_v51, %v3714_v10  ;;  %v2892_v39 = vpop.f32.mrb[38].mxu1 }
 0x160   :  { %v2646_v37 = vpack.c.bf16 %v1995_v52, %v1995_v52  ;;  %v1996_v38 = vadd.f32 %v3018_v33, %v3714_v10  ;;  %v1163_v3 = vpop.f32.mrb[39].mxu1 }
 0x161   :  { %2318 = vst.msk [vmem:[%s4071_s7 + $0x78] sm:$0xf] %vm2287_vm2, %v2648_v1  ;;  %v2649_v2 = vpack.c.bf16 %v1998_v35, %v1998_v35 }
 0x162   :  { %2316 = vst.msk [vmem:[%s4071_s7 + $0x70] sm:$0xf] %vm2287_vm2, %v2646_v37  ;;  %v2647_v4 = vpack.c.bf16 %v1996_v38, %v1996_v38  ;;  %v2955_v40 = vpop.f32.mrb[32].mxu0 }
 0x163   :  { %2319 = vst.msk [vmem:[%s4071_s7 + $0x7c] sm:$0xf] %vm2287_vm2, %v2649_v2  ;;  %v3019_v41 = vadd.f32 %v2955_v40, %v3703_v5  ;;  %v1769_v53 = vpop.f32.mrb[33].mxu0 }
 0x164   :  { %2317 = vst.msk [vmem:[%s4071_s7 + $0x74] sm:$0xf] %vm2287_vm2, %v2647_v4  ;;  %v3020_v42 = vadd.f32 %v1769_v53, %v3705_v6  ;;  %v2956_v43 = vpop.f32.mrb[34].mxu0 }
 0x165   :  { %v2001_v54 = vadd.f32 %v3019_v41, %v3714_v10  ;;  %v3021_v55 = vadd.f32 %v2956_v43, %v3707_v7  ;;  %v1772_v44 = vpop.f32.mrb[35].mxu0  ;;  %v2895_v11 = vpop.f32.mrb[40].mxu1 }
 0x166   :  { %v1999_v56 = vadd.f32 %v3020_v42, %v3714_v10  ;;  %v3022_v9 = vadd.f32 %v1772_v44, %v3709_v8  ;;  %v1176_v13 = vpop.f32.mrb[41].mxu1 }
 0x167   :  { %v2652_v5 = vpack.c.bf16 %v2001_v54, %v2001_v54  ;;  %v2002_v12 = vadd.f32 %v3021_v55, %v3714_v10  ;;  %v2896_v16 = vpop.f32.mrb[42].mxu1 }
 0x168   :  { %v2650_v14 = vpack.c.bf16 %v1999_v56, %v1999_v56  ;;  %v2000_v15 = vadd.f32 %v3022_v9, %v3714_v10  ;;  %v1179_v7 = vpop.f32.mrb[43].mxu1 }
 0x169   :  { %2322 = vst.msk [vmem:[%s4071_s7 + $0x88] sm:$0xf] %vm2287_vm2, %v2652_v5  ;;  %v2653_v6 = vpack.c.bf16 %v2002_v12, %v2002_v12 }
 0x16a   :  { %2320 = vst.msk [vmem:[%s4071_s7 + $0x80] sm:$0xf] %vm2287_vm2, %v2650_v14  ;;  %v2651_v8 = vpack.c.bf16 %v2000_v15, %v2000_v15  ;;  %v2959_v17 = vpop.f32.mrb[36].mxu0 }
 0x16b   :  { %2323 = vst.msk [vmem:[%s4071_s7 + $0x8c] sm:$0xf] %vm2287_vm2, %v2653_v6  ;;  %v3023_v45 = vadd.f32 %v2959_v17, %v2891_v34  ;;  %v1785_v57 = vpop.f32.mrb[37].mxu0 }
 0x16c   :  { %2321 = vst.msk [vmem:[%s4071_s7 + $0x84] sm:$0xf] %vm2287_vm2, %v2651_v8  ;;  %v3024_v18 = vadd.f32 %v1785_v57, %v1160_v36  ;;  %v2960_v19 = vpop.f32.mrb[38].mxu0 }
 0x16d   :  { %v2005_v58 = vadd.f32 %v3023_v45, %v3714_v10  ;;  %v3025_v59 = vadd.f32 %v2960_v19, %v2892_v39  ;;  %v1788_v46 = vpop.f32.mrb[39].mxu0  ;;  %v2899_v20 = vpop.f32.mrb[44].mxu1 }
 0x16e   :  { %v2003_v60 = vadd.f32 %v3024_v18, %v3714_v10  ;;  %v3026_v47 = vadd.f32 %v1788_v46, %v1163_v3  ;;  %v1192_v22 = vpop.f32.mrb[45].mxu1 }
 0x16f   :  { %v2656_v48 = vpack.c.bf16 %v2005_v58, %v2005_v58  ;;  %v2006_v21 = vadd.f32 %v3025_v59, %v3714_v10  ;;  %v2900_v25 = vpop.f32.mrb[46].mxu1 }
 0x170   :  { %v2654_v23 = vpack.c.bf16 %v2003_v60, %v2003_v60  ;;  %v2004_v24 = vadd.f32 %v3026_v47, %v3714_v10  ;;  %v1195_v61 = vpop.f32.mrb[47].mxu1 }
 0x171   :  { %2326 = vst.msk [vmem:[%s4071_s7 + $0x98] sm:$0xf] %vm2287_vm2, %v2656_v48  ;;  %v2657_v26 = vpack.c.bf16 %v2006_v21, %v2006_v21 }
 0x172   :  { %2324 = vst.msk [vmem:[%s4071_s7 + $0x90] sm:$0xf] %vm2287_vm2, %v2654_v23  ;;  %v2655_v27 = vpack.c.bf16 %v2004_v24, %v2004_v24  ;;  %v2963_v28 = vpop.f32.mrb[40].mxu0 }
 0x173   :  { %2327 = vst.msk [vmem:[%s4071_s7 + $0x9c] sm:$0xf] %vm2287_vm2, %v2657_v26  ;;  %v3027_v62 = vadd.f32 %v2963_v28, %v2895_v11  ;;  %v1801_v63 = vpop.f32.mrb[41].mxu0 }
 0x174   :  { %2325 = vst.msk [vmem:[%s4071_s7 + $0x94] sm:$0xf] %vm2287_vm2, %v2655_v27  ;;  %v3028_v29 = vadd.f32 %v1801_v63, %v1176_v13  ;;  %v2964_v0 = vpop.f32.mrb[42].mxu0 }
 0x175   :  { %v2009_v49 = vadd.f32 %v3027_v62, %v3714_v10  ;;  %v3029_v30 = vadd.f32 %v2964_v0, %v2896_v16  ;;  %v1804_v31 = vpop.f32.mrb[43].mxu0  ;;  %v2903_v32 = vpop.f32.mrb[48].mxu1 }
 0x176   :  { %v2007_v50 = vadd.f32 %v3028_v29, %v3714_v10  ;;  %v3030_v51 = vadd.f32 %v1804_v31, %v1179_v7  ;;  %v1208_v34 = vpop.f32.mrb[49].mxu1 }
 0x177   :  { %v2660_v52 = vpack.c.bf16 %v2009_v49, %v2009_v49  ;;  %v2010_v33 = vadd.f32 %v3029_v30, %v3714_v10  ;;  %v2904_v36 = vpop.f32.mrb[50].mxu1 }
 0x178   :  { %v2658_v1 = vpack.c.bf16 %v2007_v50, %v2007_v50  ;;  %v2008_v35 = vadd.f32 %v3030_v51, %v3714_v10  ;;  %v1211_v38 = vpop.f32.mrb[51].mxu1 }
 0x179   :  { %2330 = vst.msk [vmem:[%s4071_s7 + $0xa8] sm:$0xf] %vm2287_vm2, %v2660_v52  ;;  %v2661_v37 = vpack.c.bf16 %v2010_v33, %v2010_v33 }
 0x17a   :  { %2328 = vst.msk [vmem:[%s4071_s7 + $0xa0] sm:$0xf] %vm2287_vm2, %v2658_v1  ;;  %v2659_v39 = vpack.c.bf16 %v2008_v35, %v2008_v35  ;;  %v2967_v2 = vpop.f32.mrb[44].mxu0 }
 0x17b   :  { %2331 = vst.msk [vmem:[%s4071_s7 + $0xac] sm:$0xf] %vm2287_vm2, %v2661_v37  ;;  %v3031_v3 = vadd.f32 %v2967_v2, %v2899_v20  ;;  %v1817_v4 = vpop.f32.mrb[45].mxu0 }
 0x17c   :  { %2329 = vst.msk [vmem:[%s4071_s7 + $0xa4] sm:$0xf] %vm2287_vm2, %v2659_v39  ;;  %v3032_v40 = vadd.f32 %v1817_v4, %v1192_v22  ;;  %v2968_v41 = vpop.f32.mrb[46].mxu0 }
 0x17d   :  { %v2013_v53 = vadd.f32 %v3031_v3, %v3714_v10  ;;  %v3033_v42 = vadd.f32 %v2968_v41, %v2900_v25  ;;  %v1820_v43 = vpop.f32.mrb[47].mxu0  ;;  %v2907_v44 = vpop.f32.mrb[52].mxu1 }
 0x17e   :  { %v2011_v54 = vadd.f32 %v3032_v40, %v3714_v10  ;;  %v3034_v55 = vadd.f32 %v1820_v43, %v1195_v61  ;;  %v1224_v11 = vpop.f32.mrb[53].mxu1 }
 0x17f   :  { %v2664_v56 = vpack.c.bf16 %v2013_v53, %v2013_v53  ;;  %v2014_v9 = vadd.f32 %v3033_v42, %v3714_v10  ;;  %v2908_v13 = vpop.f32.mrb[54].mxu1 }
 0x180   :  { %v2662_v5 = vpack.c.bf16 %v2011_v54, %v2011_v54  ;;  %v2012_v12 = vadd.f32 %v3034_v55, %v3714_v10  ;;  %v1227_v15 = vpop.f32.mrb[55].mxu1 }
 0x181   :  { %2334 = vst.msk [vmem:[%s4071_s7 + $0xb8] sm:$0xf] %vm2287_vm2, %v2664_v56  ;;  %v2665_v14 = vpack.c.bf16 %v2014_v9, %v2014_v9 }
 0x182   :  { %2332 = vst.msk [vmem:[%s4071_s7 + $0xb0] sm:$0xf] %vm2287_vm2, %v2662_v5  ;;  %v2663_v16 = vpack.c.bf16 %v2012_v12, %v2012_v12  ;;  %v2971_v6 = vpop.f32.mrb[48].mxu0 }
 0x183   :  { %2335 = vst.msk [vmem:[%s4071_s7 + $0xbc] sm:$0xf] %vm2287_vm2, %v2665_v14  ;;  %v3035_v7 = vadd.f32 %v2971_v6, %v2903_v32  ;;  %v1833_v8 = vpop.f32.mrb[49].mxu0 }
 0x184   :  { %2333 = vst.msk [vmem:[%s4071_s7 + $0xb4] sm:$0xf] %vm2287_vm2, %v2663_v16  ;;  %v3036_v17 = vadd.f32 %v1833_v8, %v1208_v34  ;;  %v2972_v45 = vpop.f32.mrb[50].mxu0 }
 0x185   :  { %v2017_v57 = vadd.f32 %v3035_v7, %v3714_v10  ;;  %v3037_v18 = vadd.f32 %v2972_v45, %v2904_v36  ;;  %v1836_v19 = vpop.f32.mrb[51].mxu0  ;;  %v2911_v46 = vpop.f32.mrb[56].mxu1 }
 0x186   :  { %v2015_v58 = vadd.f32 %v3036_v17, %v3714_v10  ;;  %v3038_v59 = vadd.f32 %v1836_v19, %v1211_v38  ;;  %v1240_v20 = vpop.f32.mrb[57].mxu1 }
 0x187   :  { %v2668_v60 = vpack.c.bf16 %v2017_v57, %v2017_v57  ;;  %v2018_v47 = vadd.f32 %v3037_v18, %v3714_v10  ;;  %v2912_v22 = vpop.f32.mrb[58].mxu1 }
 0x188   :  { %v2666_v48 = vpack.c.bf16 %v2015_v58, %v2015_v58  ;;  %v2016_v21 = vadd.f32 %v3038_v59, %v3714_v10  ;;  %v1243_v24 = vpop.f32.mrb[59].mxu1 }
 0x189   :  { %2338 = vst.msk [vmem:[%s4071_s7 + $0xc8] sm:$0xf] %vm2287_vm2, %v2668_v60  ;;  %v2669_v23 = vpack.c.bf16 %v2018_v47, %v2018_v47 }
 0x18a   :  { %2336 = vst.msk [vmem:[%s4071_s7 + $0xc0] sm:$0xf] %vm2287_vm2, %v2666_v48  ;;  %v2667_v25 = vpack.c.bf16 %v2016_v21, %v2016_v21  ;;  %v2975_v26 = vpop.f32.mrb[52].mxu0 }
 0x18b   :  { %2339 = vst.msk [vmem:[%s4071_s7 + $0xcc] sm:$0xf] %vm2287_vm2, %v2669_v23  ;;  %v3039_v61 = vadd.f32 %v2975_v26, %v2907_v44  ;;  %v1849_v27 = vpop.f32.mrb[53].mxu0 }
 0x18c   :  { %2337 = vst.msk [vmem:[%s4071_s7 + $0xc4] sm:$0xf] %vm2287_vm2, %v2667_v25  ;;  %v3040_v28 = vadd.f32 %v1849_v27, %v1224_v11  ;;  %v2976_v62 = vpop.f32.mrb[54].mxu0 }
 0x18d   :  { %v2021_v63 = vadd.f32 %v3039_v61, %v3714_v10  ;;  %v3041_v29 = vadd.f32 %v2976_v62, %v2908_v13  ;;  %v1852_v0 = vpop.f32.mrb[55].mxu0  ;;  %v2915_v31 = vpop.f32.mrb[60].mxu1 }
 0x18e   :  { %v2019_v49 = vadd.f32 %v3040_v28, %v3714_v10  ;;  %v3042_v30 = vadd.f32 %v1852_v0, %v1227_v15  ;;  %v1256_v32 = vpop.f32.mrb[61].mxu1 }
 0x18f   :  { %v2672_v50 = vpack.c.bf16 %v2021_v63, %v2021_v63  ;;  %v2022_v51 = vadd.f32 %v3041_v29, %v3714_v10  ;;  %v2916_v34 = vpop.f32.mrb[62].mxu1 }
 0x190   :  { %v2670_v52 = vpack.c.bf16 %v2019_v49, %v2019_v49  ;;  %v2020_v33 = vadd.f32 %v3042_v30, %v3714_v10  ;;  %v1259_v35 = vpop.f32.mrb[63].mxu1 }
 0x191   :  { %2342 = vst.msk [vmem:[%s4071_s7 + $0xd8] sm:$0xf] %vm2287_vm2, %v2672_v50  ;;  %v2673_v1 = vpack.c.bf16 %v2022_v51, %v2022_v51 }
 0x192   :  { %2340 = vst.msk [vmem:[%s4071_s7 + $0xd0] sm:$0xf] %vm2287_vm2, %v2670_v52  ;;  %v2671_v36 = vpack.c.bf16 %v2020_v33, %v2020_v33  ;;  %v2979_v37 = vpop.f32.mrb[56].mxu0 }
 0x193   :  { %2343 = vst.msk [vmem:[%s4071_s7 + $0xdc] sm:$0xf] %vm2287_vm2, %v2673_v1  ;;  %v3043_v38 = vadd.f32 %v2979_v37, %v2911_v46  ;;  %v1865_v39 = vpop.f32.mrb[57].mxu0 }
 0x194   :  { %2341 = vst.msk [vmem:[%s4071_s7 + $0xd4] sm:$0xf] %vm2287_vm2, %v2671_v36  ;;  %v3044_v2 = vadd.f32 %v1865_v39, %v1240_v20  ;;  %v2980_v3 = vpop.f32.mrb[58].mxu0 }
 0x195   :  { %v2025_v4 = vadd.f32 %v3043_v38, %v3714_v10  ;;  %v3045_v40 = vadd.f32 %v2980_v3, %v2912_v22  ;;  %v1868_v41 = vpop.f32.mrb[59].mxu0 }
 0x196   :  { %v2023_v53 = vadd.f32 %v3044_v2, %v3714_v10  ;;  %v3046_v42 = vadd.f32 %v1868_v41, %v1243_v24 }
 0x197   :  { %v2676_v43 = vpack.c.bf16 %v2025_v4, %v2025_v4  ;;  %v2026_v54 = vadd.f32 %v3045_v40, %v3714_v10 }
 0x198   :  { %v2674_v55 = vpack.c.bf16 %v2023_v53, %v2023_v53  ;;  %v2024_v44 = vadd.f32 %v3046_v42, %v3714_v10 }
 0x199   :  { %2346 = vst.msk [vmem:[%s4071_s7 + $0xe8] sm:$0xf] %vm2287_vm2, %v2676_v43  ;;  %v2677_v56 = vpack.c.bf16 %v2026_v54, %v2026_v54 }
 0x19a   :  { %2344 = vst.msk [vmem:[%s4071_s7 + $0xe0] sm:$0xf] %vm2287_vm2, %v2674_v55  ;;  %v2675_v9 = vpack.c.bf16 %v2024_v44, %v2024_v44  ;;  %v2983_v11 = vpop.f32.mrb[60].mxu0 }
 0x19b   :  { %2347 = vst.msk [vmem:[%s4071_s7 + $0xec] sm:$0xf] %vm2287_vm2, %v2677_v56  ;;  %v3047_v5 = vadd.f32 %v2983_v11, %v2915_v31  ;;  %v1881_v12 = vpop.f32.mrb[61].mxu0 }
 0x19c   :  { %2345 = vst.msk [vmem:[%s4071_s7 + $0xe4] sm:$0xf] %vm2287_vm2, %v2675_v9  ;;  %v3048_v13 = vadd.f32 %v1881_v12, %v1256_v32  ;;  %v2984_v14 = vpop.f32.mrb[62].mxu0 }
 0x19d   :  { %v2029_v15 = vadd.f32 %v3047_v5, %v3714_v10  ;;  %v3049_v16 = vadd.f32 %v2984_v14, %v2916_v34  ;;  %v1884_v6 = vpop.f32.mrb[63].mxu0 }
 0x19e   :  { %v2027_v7 = vadd.f32 %v3048_v13, %v3714_v10  ;;  %v3050_v8 = vadd.f32 %v1884_v6, %v1259_v35 }
 0x19f   :  { %v2680_v17 = vpack.c.bf16 %v2029_v15, %v2029_v15  ;;  %v2030_v45 = vadd.f32 %v3049_v16, %v3714_v10 }
 0x1a0   :  { %v2678_v57 = vpack.c.bf16 %v2027_v7, %v2027_v7  ;;  %v2028_v18 = vadd.f32 %v3050_v8, %v3714_v10 }
 0x1a1   :  { %2350 = vst.msk [vmem:[%s4071_s7 + $0xf8] sm:$0xf] %vm2287_vm2, %v2680_v17  ;;  %v2681_v19 = vpack.c.bf16 %v2030_v45, %v2030_v45 }
 0x1a2   :  { %2348 = vst.msk [vmem:[%s4071_s7 + $0xf0] sm:$0xf] %vm2287_vm2, %v2678_v57  ;;  %v2679_v58 = vpack.c.bf16 %v2028_v18, %v2028_v18 }
 0x1a3   :  { %2351 = vst.msk [vmem:[%s4071_s7 + $0xfc] sm:$0xf] %vm2287_vm2, %v2681_v19 }
 0x1a4   :  { %2349 = vst.msk [vmem:[%s4071_s7 + $0xf4] sm:$0xf] %vm2287_vm2, %v2679_v58 }

// kernel: base_extend_sam_forward.6
= control target key start
LH: loop header
LB: loop body
LE: loop exit
PB: predicated region body
PF: predicated region fallthrough
CT: control target
= control target key end

     0   :  { %vm114_vm0 = vcmask 261120   ;;  %vm1816_vm11 = vcmask 7168   ;;  %s1813_s0 = inlined_call_operand.vmem [shape: bf16[256,32], index: 0, kind: input, shape index: {}]   ;;  %s1814_s1 = inlined_call_operand.vmem [shape: f32[1,32], index: 1, kind: input, shape index: {}]   ;;  %s1815_s2 = inlined_call_operand.vmem [shape: f32[256,1], index: 2, kind: output, shape index: {}]  }
   0x1   :  { %v761_v0 = vld [vmem:[%s1813_s0 + $0x8] sm:$0xff]   ;;  %v925_v1 = vld [vmem:[%s1814_s1] ss:$0 sm:$0xff]  ;;  %v762_v7 = vld [vmem:[%s1813_s0 + $0x10] sm:$0xff]  }
   0x2   :  { %v698_v2 = vld [vmem:[%s1813_s0] sm:$0xff]   ;;  %v703_v3 = vunpack.c.l.bf16 %v761_v0  ;;  %v704_v5 = vunpack.c.h.bf16 %v761_v0  ;;  %v708_v8 = vunpack.c.h.bf16 %v762_v7  ;;  %v707_v9 = vunpack.c.l.bf16 %v762_v7  ;;  %v763_v14 = vld [vmem:[%s1813_s0 + $0x18] sm:$0xff]   ;;  %v765_v24 = vld [vmem:[%s1813_s0 + $0x28] sm:$0xff]  }
   0x3   :  { %v699_v4 = vunpack.c.l.bf16 %v698_v2  ;;  %v700_v6 = vunpack.c.h.bf16 %v698_v2  ;;  %v712_v17 = vunpack.c.h.bf16 %v763_v14  ;;  %v711_v18 = vunpack.c.l.bf16 %v763_v14  ;;  %v764_v19 = vld [vmem:[%s1813_s0 + $0x20] sm:$0xff]   ;;  %v766_v25 = vld [vmem:[%s1813_s0 + $0x30] sm:$0xff]   ;;  %v767_v57 = vld [vmem:[%s1813_s0 + $0x38] sm:$0xff]  }
   0x4   :  { %v84_v10 = vmul.f32 %v703_v3, %v925_v1  ;;  %v85_v12 = vmul.f32 %v704_v5, %v925_v1  ;;  %v87_v22 = vmul.f32 %v708_v8, %v925_v1  ;;  %v86_v23 = vmul.f32 %v707_v9, %v925_v1  ;;  %v770_v52 = vld [vmem:[%s1813_s0 + $0x50] sm:$0xff]   ;;  %v768_v58 = vld [vmem:[%s1813_s0 + $0x40] sm:$0xff]   ;;  %v769_v63 = vld [vmem:[%s1813_s0 + $0x48] sm:$0xff]  }
   0x5   :  { %v82_v11 = vmul.f32 %v699_v4, %v925_v1  ;;  %v83_v13 = vmul.f32 %v700_v6, %v925_v1  ;;  %v955_v26 = vunpack.c.h.bf16 %v764_v19  ;;  %v89_v27 = vmul.f32 %v712_v17, %v925_v1  ;;  %v771_v0 = vld [vmem:[%s1813_s0 + $0x58] sm:$0xff]   ;;  %v773_v7 = vld [vmem:[%s1813_s0 + $0x68] sm:$0xff]  }
   0x6   :  { %v121_v15 = vsel %vm114_vm0, %v84_v10, 0.0  ;;  %v124_v20 = vsel %vm114_vm0, %v85_v12, 0.0  ;;  %v715_v28 = vunpack.c.l.bf16 %v764_v19  ;;  %v958_v29 = vunpack.c.h.bf16 %v765_v24 }
   0x7   :  { %v115_v16 = vsel %vm114_vm0, %v82_v11, 0.0  ;;  %122 = vadd.xlane.f32.xlu1 %v121_v15  ;;  %v118_v21 = vsel %vm114_vm0, %v83_v13, 0.0  ;;  %v960_v30 = vunpack.c.l.bf16 %v765_v24  ;;  %v130_v31 = vsel %vm114_vm0, %v87_v22, 0.0 }
   0x8   :  { %116 = vadd.xlane.f32.xlu0 %v115_v16  ;;  %v127_v32 = vsel %vm114_vm0, %v86_v23, 0.0  ;;  %v88_v33 = vmul.f32 %v711_v18, %v925_v1  ;;  %v965_v34 = vunpack.c.l.bf16 %v766_v25  ;;  %v91_v35 = vmul.f32 %v955_v26, %v925_v1 }
   0x9   :  { %v211_v36 = vmul.f32 %v699_v4, %v699_v4  ;;  %v213_v37 = vmul.f32 %v703_v3, %v703_v3  ;;  %v212_v38 = vmul.f32 %v700_v6, %v700_v6  ;;  %v90_v39 = vmul.f32 %v715_v28, %v925_v1  ;;  %v772_v6 = vld [vmem:[%s1813_s0 + $0x60] sm:$0xff]  }
   0xa   :  { %v93_v40 = vmul.f32 %v958_v29, %v925_v1  ;;  %v92_v41 = vmul.f32 %v960_v30, %v925_v1  ;;  %v136_v42 = vsel %vm114_vm0, %v89_v27, 0.0  ;;  %v133_v43 = vsel %vm114_vm0, %v88_v33, 0.0 }
   0xb   :  { %125 = vadd.xlane.f32.xlu1 %v124_v20  ;;  %v94_v44 = vmul.f32 %v965_v34, %v925_v1  ;;  %v215_v45 = vmul.f32 %v707_v9, %v707_v9  ;;  %v214_v46 = vmul.f32 %v704_v5, %v704_v5  ;;  %v217_v47 = vmul.f32 %v711_v18, %v711_v18  ;;  %v774_v20 = vld [vmem:[%s1813_s0 + $0x70] sm:$0xff]  }
   0xc   :  { %119 = vadd.xlane.f32.xlu0 %v118_v21  ;;  %v216_v48 = vmul.f32 %v708_v8, %v708_v8  ;;  %v979_v49 = vsel %vm114_vm0, %v211_v36, 0.0  ;;  %v982_v50 = vsel %vm114_vm0, %v213_v37, 0.0  ;;  %v985_v51 = vsel %vm114_vm0, %v212_v38, 0.0 }
   0xd   :  { %v142_v53 = vsel %vm114_vm0, %v91_v35, 0.0  ;;  %v139_v54 = vsel %vm114_vm0, %v90_v39, 0.0  ;;  %v148_v55 = vsel %vm114_vm0, %v93_v40, 0.0  ;;  %v145_v56 = vsel %vm114_vm0, %v92_v41, 0.0 }
   0xe   :  { %v151_v59 = vsel %vm114_vm0, %v94_v44, 0.0  ;;  %v1002_v60 = vsel %vm114_vm0, %v215_v45, 0.0  ;;  %v1004_v61 = vmul.f32 %v715_v28, %v715_v28  ;;  %v1006_v62 = vmul.f32 %v712_v17, %v712_v17 }
   0xf   :  { %131 = vadd.xlane.f32.xlu1 %v130_v31  ;;  %v1015_v2 = vsel %vm114_vm0, %v214_v46, 0.0  ;;  %v1018_v3 = vsel %vm114_vm0, %v217_v47, 0.0  ;;  %v1021_v4 = vsel %vm114_vm0, %v216_v48, 0.0  ;;  %v1023_v5 = vunpack.c.l.bf16 %v770_v52 }
  0x10   :  { %128 = vadd.xlane.f32.xlu0 %v127_v32  ;;  %v1031_v8 = vunpack.c.l.bf16 %v767_v57  ;;  %v1033_v9 = vunpack.c.h.bf16 %v766_v25  ;;  %v1035_v10 = vunpack.c.l.bf16 %v768_v58  ;;  %v1037_v11 = vunpack.c.h.bf16 %v767_v57  ;;  %v775_v32 = vld [vmem:[%s1813_s0 + $0x78] sm:$0xff]  }
  0x11   :  { %v1039_v12 = vunpack.c.l.bf16 %v769_v63  ;;  %v1041_v13 = vunpack.c.h.bf16 %v768_v58  ;;  %v231_v14 = vmul.f32 %v1023_v5, %v1023_v5  ;;  %v743_v15 = vunpack.c.l.bf16 %v771_v0 }
  0x12   :  { %v740_v16 = vunpack.c.h.bf16 %v770_v52  ;;  %v747_v17 = vunpack.c.l.bf16 %v772_v6  ;;  %v744_v18 = vunpack.c.h.bf16 %v771_v0  ;;  %v1045_v19 = vunpack.c.l.bf16 %v773_v7 }
  0x13   :  { %137 = vadd.xlane.f32.xlu1 %v136_v42  ;;  %v1051_v21 = vsel %vm114_vm0, %v231_v14, 0.0  ;;  %v1053_v22 = vunpack.c.h.bf16 %v769_v63  ;;  %v233_v23 = vmul.f32 %v743_v15, %v743_v15  ;;  %v748_v24 = vunpack.c.h.bf16 %v772_v6 }
  0x14   :  { %134 = vadd.xlane.f32.xlu0 %v133_v43  ;;  %v232_v25 = vmul.f32 %v740_v16, %v740_v16  ;;  %v235_v27 = vmul.f32 %v747_v17, %v747_v17  ;;  %v234_v28 = vmul.f32 %v744_v18, %v744_v18  ;;  %v237_v31 = vmul.f32 %v1045_v19, %v1045_v19 }
  0x15   :  { %v1061_v33 = vsel %vm114_vm0, %v233_v23, 0.0  ;;  %v236_v35 = vmul.f32 %v748_v24, %v748_v24  ;;  %v755_v36 = vunpack.c.l.bf16 %v774_v20  ;;  %v752_v37 = vunpack.c.h.bf16 %v773_v7 }
  0x16   :  { %v1064_v38 = vsel %vm114_vm0, %v232_v25, 0.0  ;;  %v1067_v39 = vsel %vm114_vm0, %v235_v27, 0.0  ;;  %v1070_v40 = vsel %vm114_vm0, %v234_v28, 0.0  ;;  %v1073_v41 = vsel %vm114_vm0, %v237_v31, 0.0 }
  0x17   :  { %143 = vadd.xlane.f32.xlu1 %v142_v53  ;;  %v1076_v42 = vsel %vm114_vm0, %v236_v35, 0.0  ;;  %v239_v43 = vmul.f32 %v755_v36, %v755_v36  ;;  %v238_v44 = vmul.f32 %v752_v37, %v752_v37  ;;  %v759_v45 = vunpack.c.l.bf16 %v775_v32 }
  0x18   :  { %140 = vadd.xlane.f32.xlu0 %v139_v54  ;;  %v756_v46 = vunpack.c.h.bf16 %v774_v20  ;;  %v95_v47 = vmul.f32 %v1033_v9, %v925_v1  ;;  %v760_v48 = vunpack.c.h.bf16 %v775_v32  ;;  %v97_v52 = vmul.f32 %v1037_v11, %v925_v1 }
  0x19   :  { %v1084_v53 = vsel %vm114_vm0, %v239_v43, 0.0  ;;  %v1087_v54 = vsel %vm114_vm0, %v238_v44, 0.0  ;;  %v99_v6 = vmul.f32 %v1041_v13, %v925_v1  ;;  %v98_v7 = vmul.f32 %v1035_v10, %v925_v1 }
  0x1a   :  { %v240_v57 = vmul.f32 %v756_v46, %v756_v46  ;;  %v1092_v58 = vsel %vm114_vm0, %v95_v47, 0.0  ;;  %v242_v63 = vmul.f32 %v760_v48, %v760_v48  ;;  %v1095_v0 = vsel %vm114_vm0, %v97_v52, 0.0 }
  0x1b   :  { %149 = vadd.xlane.f32.xlu1 %v148_v55  ;;  %v241_v55 = vmul.f32 %v759_v45, %v759_v45  ;;  %v101_v23 = vmul.f32 %v1053_v22, %v925_v1  ;;  %v100_v25 = vmul.f32 %v1039_v12, %v925_v1  ;;  %v1120_v27 = vsel %vm114_vm0, %v99_v6, 0.0 }
  0x1c   :  { %146 = vadd.xlane.f32.xlu0 %v145_v56  ;;  %v96_v56 = vmul.f32 %v1031_v8, %v925_v1  ;;  %v1108_v14 = vsel %vm114_vm0, %v240_v57, 0.0  ;;  %v1111_v20 = vsel %vm114_vm0, %v242_v63, 0.0  ;;  %v1123_v28 = vsel %vm114_vm0, %v98_v7, 0.0 }
  0x1d   :  { %v103_v31 = vmul.f32 %v740_v16, %v925_v1  ;;  %v102_v32 = vmul.f32 %v1023_v5, %v925_v1  ;;  %v1129_v35 = vsel %vm114_vm0, %v101_v23, 0.0  ;;  %v1132_v43 = vsel %vm114_vm0, %v100_v25, 0.0 }
  0x1e   :  { %v107_v16 = vmul.f32 %v748_v24, %v925_v1  ;;  %v106_v5 = vmul.f32 %v747_v17, %v925_v1  ;;  %v111_v24 = vmul.f32 %v756_v46, %v925_v1  ;;  %v110_v57 = vmul.f32 %v755_v36, %v925_v1 }
  0x1f   :  { %244 = vadd.xlane.f32.xlu1 %v979_v49  ;;  %v1098_v49 = vsel %vm114_vm0, %v241_v55, 0.0  ;;  %v1137_v44 = vsel %vm114_vm0, %v103_v31, 0.0  ;;  %v1140_v47 = vsel %vm114_vm0, %v102_v32, 0.0  ;;  %v220_v7 = vmul.f32 %v955_v26, %v955_v26 }
  0x20   :  { %152 = vadd.xlane.f32.xlu0 %v151_v59  ;;  %v1101_v59 = vsel %vm114_vm0, %v96_v56, 0.0  ;;  %v1156_v56 = vsel %vm114_vm0, %v107_v16, 0.0  ;;  %v1159_v17 = vsel %vm114_vm0, %v106_v5, 0.0  ;;  %v1175_v6 = vsel %vm114_vm0, %v110_v57, 0.0 }
  0x21   :  { %v225_v26 = vmul.f32 %v1031_v8, %v1031_v8  ;;  %v224_v25 = vmul.f32 %v1033_v9, %v1033_v9  ;;  %v226_v32 = vmul.f32 %v1037_v11, %v1037_v11  ;;  %v229_v9 = vmul.f32 %v1039_v12, %v1039_v12 }
  0x22   :  { %v230_v11 = vmul.f32 %v1053_v22, %v1053_v22 }
  0x23   :  { %250 = vadd.xlane.f32.xlu1 %v982_v50  ;;  %v105_v50 = vmul.f32 %v744_v18, %v925_v1  ;;  %v109_v18 = vmul.f32 %v752_v37, %v925_v1  ;;  %v285_v31 = vsel %vm114_vm0, %v225_v26, 0.0  ;;  %v288_v8 = vsel %vm114_vm0, %v226_v32, 0.0 }
  0x24   :  { %247 = vadd.xlane.f32.xlu0 %v985_v51  ;;  %v104_v51 = vmul.f32 %v743_v15, %v925_v1  ;;  %v108_v15 = vmul.f32 %v1045_v19, %v925_v1  ;;  %v1172_v19 = vsel %vm114_vm0, %v111_v24, 0.0  ;;  %v297_v16 = vsel %vm114_vm0, %v229_v9, 0.0 }
  0x25   :  { %v1145_v52 = vsel %vm114_vm0, %v105_v50, 0.0  ;;  %v1164_v63 = vsel %vm114_vm0, %v109_v18, 0.0  ;;  %v300_v5 = vsel %vm114_vm0, %v230_v11, 0.0 }
  0x26   :  { %v1148_v55 = vsel %vm114_vm0, %v104_v51, 0.0  ;;  %v1167_v37 = vsel %vm114_vm0, %v108_v15, 0.0  ;;  %v228_v51 = vmul.f32 %v1041_v13, %v1041_v13 }
  0x27   :  { %256 = vadd.xlane.f32.xlu1 %v1002_v60  ;;  %v113_v60 = vmul.f32 %v760_v48, %v925_v1  ;;  %v267_v48 = vsel %vm114_vm0, %v1004_v61, 0.0  ;;  %v222_v61 = vmul.f32 %v958_v29, %v958_v29  ;;  %v227_v29 = vmul.f32 %v1035_v10, %v1035_v10 }
  0x28   :  { %253 = vadd.xlane.f32.xlu0 %v1015_v2  ;;  %v112_v2 = vmul.f32 %v759_v45, %v925_v1  ;;  %v264_v1 = vsel %vm114_vm0, %v1006_v62, 0.0  ;;  %v221_v45 = vmul.f32 %v960_v30, %v960_v30  ;;  %v294_v10 = vsel %vm114_vm0, %v228_v51, 0.0 }
  0x29   :  { %v1178_v46 = vsel %vm114_vm0, %v113_v60, 0.0  ;;  %v276_v30 = vsel %vm114_vm0, %v222_v61, 0.0  ;;  %v291_v50 = vsel %vm114_vm0, %v227_v29, 0.0 }
  0x2a   :  { %v1181_v36 = vsel %vm114_vm0, %v112_v2, 0.0  ;;  %v273_v23 = vsel %vm114_vm0, %v221_v45, 0.0 }
  0x2b   :  { %262 = vadd.xlane.f32.xlu1 %v1018_v3  ;;  %v270_v3 = vsel %vm114_vm0, %v220_v7, 0.0 }
  0x2c   :  { %259 = vadd.xlane.f32.xlu0 %v1021_v4  ;;  %v223_v4 = vmul.f32 %v965_v34, %v965_v34  ;;  %v282_v34 = vsel %vm114_vm0, %v224_v25, 0.0 }
  0x2e   :  { %v279_v62 = vsel %vm114_vm0, %v223_v4, 0.0 }
  0x2f   :  { %268 = vadd.xlane.f32.xlu1 %v267_v48 }
  0x30   :  { %265 = vadd.xlane.f32.xlu0 %v264_v1 }
  0x33   :  { %274 = vadd.xlane.f32.xlu1 %v273_v23 }
  0x34   :  { %271 = vadd.xlane.f32.xlu0 %v270_v3 }
  0x37   :  { %280 = vadd.xlane.f32.xlu1 %v279_v62 }
  0x38   :  { %277 = vadd.xlane.f32.xlu0 %v276_v30 }
  0x3b   :  { %286 = vadd.xlane.f32.xlu1 %v285_v31 }
  0x3c   :  { %283 = vadd.xlane.f32.xlu0 %v282_v34 }
  0x3f   :  { %292 = vadd.xlane.f32.xlu1 %v291_v50 }
  0x40   :  { %289 = vadd.xlane.f32.xlu0 %v288_v8 }
  0x43   :  { %298 = vadd.xlane.f32.xlu1 %v297_v16 }
  0x44   :  { %295 = vadd.xlane.f32.xlu0 %v294_v10 }
  0x47   :  { %304 = vadd.xlane.f32.xlu1 %v1051_v21 }
  0x48   :  { %301 = vadd.xlane.f32.xlu0 %v300_v5 }
  0x4b   :  { %310 = vadd.xlane.f32.xlu1 %v1061_v33 }
  0x4c   :  { %307 = vadd.xlane.f32.xlu0 %v1064_v38 }
  0x4f   :  { %316 = vadd.xlane.f32.xlu1 %v1067_v39 }
  0x50   :  { %313 = vadd.xlane.f32.xlu0 %v1070_v40 }
  0x53   :  { %322 = vadd.xlane.f32.xlu1 %v1073_v41 }
  0x54   :  { %319 = vadd.xlane.f32.xlu0 %v1076_v42 }
  0x57   :  { %328 = vadd.xlane.f32.xlu1 %v1084_v53 }
  0x58   :  { %325 = vadd.xlane.f32.xlu0 %v1087_v54 }
  0x5b   :  { %334 = vadd.xlane.f32.xlu1 %v1098_v49 }
  0x5c   :  { %331 = vadd.xlane.f32.xlu0 %v1108_v14 }
  0x5f   :  { %155 = vadd.xlane.f32.xlu1 %v1092_v58 }
  0x60   :  { %337 = vadd.xlane.f32.xlu0 %v1111_v20 }
  0x63   :  { %161 = vadd.xlane.f32.xlu1 %v1095_v0 }
  0x64   :  { %158 = vadd.xlane.f32.xlu0 %v1101_v59 }
  0x67   :  { %167 = vadd.xlane.f32.xlu1 %v1120_v27 }
  0x68   :  { %164 = vadd.xlane.f32.xlu0 %v1123_v28 }
  0x6b   :  { %173 = vadd.xlane.f32.xlu1 %v1129_v35 }
  0x6c   :  { %170 = vadd.xlane.f32.xlu0 %v1132_v43 }
  0x6f   :  { %179 = vadd.xlane.f32.xlu1 %v1137_v44 }
  0x70   :  { %176 = vadd.xlane.f32.xlu0 %v1140_v47 }
  0x73   :  { %185 = vadd.xlane.f32.xlu1 %v1145_v52 }
  0x74   :  { %182 = vadd.xlane.f32.xlu0 %v1148_v55 }
  0x77   :  { %191 = vadd.xlane.f32.xlu1 %v1156_v56 }
  0x78   :  { %188 = vadd.xlane.f32.xlu0 %v1159_v17 }
  0x7b   :  { %197 = vadd.xlane.f32.xlu1 %v1164_v63 }
  0x7c   :  { %194 = vadd.xlane.f32.xlu0 %v1167_v37 }
  0x7f   :  { %203 = vadd.xlane.f32.xlu1 %v1172_v19 }
  0x80   :  { %200 = vadd.xlane.f32.xlu0 %v1175_v6 }
  0x83   :  { %209 = vadd.xlane.f32.xlu1 %v1178_v46 }
  0x84   :  { %206 = vadd.xlane.f32.xlu0 %v1181_v36 }
  0x94   :  { %v1253_v12 = vpop.xlane.xlu1 %122 }
  0x95   :  { %v1255_v13 = vpop.xlane.xlu0 %116 }
  0x98   :  { %v1257_v21 = vpop.xlane.xlu1 %125 }
  0x99   :  { %v1259_v22 = vpop.xlane.xlu0 %119 }
  0x9c   :  { %v1261_v33 = vpop.xlane.xlu1 %131 }
  0x9d   :  { %v1263_v38 = vpop.xlane.xlu0 %128 }
  0xa0   :  { %v1265_v39 = vpop.xlane.xlu1 %137 }
  0xa1   :  { %v1267_v40 = vpop.xlane.xlu0 %134 }
  0xa4   :  { %v1269_v41 = vpop.xlane.xlu1 %143 }
  0xa5   :  { %v1271_v42 = vpop.xlane.xlu0 %140 }
  0xa8   :  { %v1273_v53 = vpop.xlane.xlu1 %149 }
  0xa9   :  { %v1275_v54 = vpop.xlane.xlu0 %146 }
  0xac   :  { %v245_v58 = vpop.xlane.xlu1 %244 }
  0xad   :  { %v1277_v0 = vpop.xlane.xlu0 %152  ;;  %776 = vrsqrt.f32 %v245_v58  ;;  %vm341_vm1 = vcmp.eq.f32.partialorder %v245_v58, inf  ;;  %v344_v44 = vand.u32 2147483648, %v245_v58  ;;  %vm343_vm2 = vcmp.eq.f32.partialorder %v245_v58, 0.0 }
  0xb0   :  { %v251_v49 = vpop.xlane.xlu1 %250 }
  0xb1   :  { %v248_v59 = vpop.xlane.xlu0 %247  ;;  %778 = vrsqrt.f32 %v251_v49  ;;  %vm355_vm3 = vcmp.eq.f32.partialorder %v251_v49, inf  ;;  %vm357_vm4 = vcmp.eq.f32.partialorder %v251_v49, 0.0  ;;  %v358_v18 = vand.u32 2147483648, %v251_v49 }
  0xb2   :  { %780 = vrsqrt.f32 %v248_v59  ;;  %vm348_vm5 = vcmp.eq.f32.partialorder %v248_v59, inf  ;;  %vm350_vm6 = vcmp.eq.f32.partialorder %v248_v59, 0.0  ;;  %v351_v24 = vand.u32 2147483648, %v248_v59 }
  0xb4   :  { %v257_v14 = vpop.xlane.xlu1 %256 }
  0xb5   :  { %v1279_v20 = vpop.xlane.xlu0 %253  ;;  %782 = vrsqrt.f32 %v257_v14  ;;  %vm369_vm7 = vcmp.eq.f32.partialorder %v257_v14, inf  ;;  %vm371_vm8 = vcmp.eq.f32.partialorder %v257_v14, 0.0  ;;  %v372_v2 = vand.u32 2147483648, %v257_v14 }
  0xb6   :  { %784 = vrsqrt.f32 %v1279_v20  ;;  %vm362_vm9 = vcmp.eq.f32.partialorder %v1279_v20, inf  ;;  %vm364_vm10 = vcmp.eq.f32.partialorder %v1279_v20, 0.0  ;;  %v365_v7 = vand.u32 2147483648, %v1279_v20 }
  0xb7   :  { %v777_v27 = vpop.eup %776 }
  0xb8   :  { %v340_v28 = vmul.f32 %v777_v27, %v245_v58  ;;  %v1282_v35 = vpop.xlane.xlu1 %262 }
  0xb9   :  { %v1284_v43 = vpop.xlane.xlu0 %259  ;;  %786 = vrsqrt.f32 %v1282_v35  ;;  %vm383_vm12 = vcmp.eq.f32.partialorder %v1282_v35, inf  ;;  %vm385_vm13 = vcmp.eq.f32.partialorder %v1282_v35, 0.0  ;;  %v386_v30 = vand.u32 2147483648, %v1282_v35 }
  0xba   :  { %v342_v47 = vsel %vm341_vm1, %v245_v58, %v340_v28  ;;  %788 = vrsqrt.f32 %v1284_v43  ;;  %vm376_vm14 = vcmp.eq.f32.partialorder %v1284_v43, inf  ;;  %vm378_vm15 = vcmp.eq.f32.partialorder %v1284_v43, 0.0 }
  0xbb   :  { %v779_v52 = vpop.eup %778  ;;  %v345_v55 = vsel %vm343_vm2, %v344_v44, %v342_v47  ;;  %v379_v10 = vand.u32 2147483648, %v1284_v43 }
  0xbc   :  { %v781_v15 = vpop.eup %780  ;;  %v563_v56 = vmax.f32 %v345_v55, 1e-08  ;;  %v354_v17 = vmul.f32 %v779_v52, %v251_v49  ;;  %v1288_v57 = vpop.xlane.xlu1 %268 }
  0xbd   :  { %v1290_v63 = vpop.xlane.xlu0 %265  ;;  %v347_v37 = vmul.f32 %v781_v15, %v248_v59  ;;  %790 = vrsqrt.f32 %v1288_v57  ;;  %vm397_vm0 = vcmp.eq.f32.partialorder %v1288_v57, inf  ;;  %vm399_vm1 = vcmp.eq.f32.partialorder %v1288_v57, 0.0 }
  0xbe   :  { %792 = vrcp.f32 %v563_v56  ;;  %v356_v60 = vsel %vm355_vm3, %v251_v49, %v354_v17  ;;  %vm390_vm2 = vcmp.eq.f32.partialorder %v1290_v63, inf  ;;  %vm392_vm3 = vcmp.eq.f32.partialorder %v1290_v63, 0.0 }
  0xbf   :  { %v783_v19 = vpop.eup %782  ;;  %v359_v6 = vsel %vm357_vm4, %v358_v18, %v356_v60  ;;  %v349_v46 = vsel %vm348_vm5, %v248_v59, %v347_v37  ;;  %794 = vrsqrt.f32 %v1290_v63  ;;  %v400_v59 = vand.u32 2147483648, %v1288_v57 }
  0xc0   :  { %v785_v36 = vpop.eup %784  ;;  %v565_v48 = vmax.f32 %v359_v6, 1e-08  ;;  %v352_v1 = vsel %vm350_vm6, %v351_v24, %v349_v46  ;;  %v368_v45 = vmul.f32 %v783_v19, %v257_v14  ;;  %v1301_v23 = vpop.xlane.xlu1 %274  ;;  %v393_v56 = vand.u32 2147483648, %v1290_v63 }
  0xc1   :  { %v1303_v3 = vpop.xlane.xlu0 %271  ;;  %v564_v4 = vmax.f32 %v352_v1, 1e-08  ;;  %v361_v61 = vmul.f32 %v785_v36, %v1279_v20  ;;  %796 = vrsqrt.f32 %v1301_v23  ;;  %vm411_vm4 = vcmp.eq.f32.partialorder %v1301_v23, inf }
  0xc2   :  { %798 = vrcp.f32 %v565_v48  ;;  %v370_v62 = vsel %vm369_vm7, %v257_v14, %v368_v45  ;;  %vm413_vm5 = vcmp.eq.f32.partialorder %v1301_v23, 0.0  ;;  %v414_v36 = vand.u32 2147483648, %v1301_v23 }
  0xc3   :  { %v787_v26 = vpop.eup %786  ;;  %800 = vrcp.f32 %v564_v4  ;;  %v373_v25 = vsel %vm371_vm8, %v372_v2, %v370_v62  ;;  %v363_v31 = vsel %vm362_vm9, %v1279_v20, %v361_v61  ;;  %vm404_vm6 = vcmp.eq.f32.partialorder %v1303_v3, inf }
  0xc4   :  { %v789_v34 = vpop.eup %788  ;;  %v567_v29 = vmax.f32 %v373_v25, 1e-08  ;;  %v366_v32 = vsel %vm364_vm10, %v365_v7, %v363_v31  ;;  %v382_v50 = vmul.f32 %v787_v26, %v1282_v35  ;;  %802 = vrsqrt.f32 %v1303_v3  ;;  %v1320_v8 = vpop.xlane.xlu1 %280 }
  0xc5   :  { %v1322_v9 = vpop.xlane.xlu0 %277  ;;  %v566_v51 = vmax.f32 %v366_v32, 1e-08  ;;  %v375_v16 = vmul.f32 %v789_v34, %v1284_v43  ;;  %vm406_vm7 = vcmp.eq.f32.partialorder %v1303_v3, 0.0  ;;  %vm425_vm8 = vcmp.eq.f32.partialorder %v1320_v8, inf }
  0xc6   :  { %804 = vrcp.f32 %v567_v29  ;;  %v384_v11 = vsel %vm383_vm12, %v1282_v35, %v382_v50  ;;  %vm427_vm9 = vcmp.eq.f32.partialorder %v1320_v8, 0.0  ;;  %vm418_vm10 = vcmp.eq.f32.partialorder %v1322_v9, inf }
  0xc7   :  { %v791_v5 = vpop.eup %790  ;;  %806 = vrcp.f32 %v566_v51  ;;  %v387_v58 = vsel %vm385_vm13, %v386_v30, %v384_v11  ;;  %v377_v49 = vsel %vm376_vm14, %v1284_v43, %v375_v16  ;;  %vm420_vm12 = vcmp.eq.f32.partialorder %v1322_v9, 0.0 }
  0xc8   :  { %v793_v14 = vpop.eup %792  ;;  %v569_v20 = vmax.f32 %v387_v58, 1e-08  ;;  %v380_v27 = vsel %vm378_vm15, %v379_v10, %v377_v49  ;;  %v396_v28 = vmul.f32 %v791_v5, %v1288_v57  ;;  %808 = vrsqrt.f32 %v1320_v8  ;;  %v1340_v44 = vpop.xlane.xlu1 %286 }
  0xc9   :  { %v1342_v47 = vpop.xlane.xlu0 %283  ;;  %v795_v52 = vpop.eup %794  ;;  %v596_v35 = vmul.f32 %v793_v14, %v1255_v13  ;;  %v568_v55 = vmax.f32 %v380_v27, 1e-08  ;;  %810 = vrsqrt.f32 %v1322_v9  ;;  %v421_v49 = vand.u32 2147483648, %v1322_v9 }
  0xca   :  { %812 = vrcp.f32 %v569_v20  ;;  %v398_v43 = vsel %vm397_vm0, %v1288_v57, %v396_v28  ;;  %v389_v18 = vmul.f32 %v795_v52, %v1290_v63  ;;  %vm439_vm13 = vcmp.eq.f32.partialorder %v1340_v44, inf }
  0xcb   :  { %v797_v15 = vpop.eup %796  ;;  %660 = vst.msk [vmem:[%s1815_s2] sm:$0xff] %vm1816_vm11, %v596_v35  ;;  %814 = vrcp.f32 %v568_v55  ;;  %v401_v13 = vsel %vm399_vm1, %v400_v59, %v398_v43  ;;  %vm432_vm14 = vcmp.eq.f32.partialorder %v1342_v47, inf }
  0xcc   :  { %v799_v17 = vpop.eup %798  ;;  %v571_v24 = vmax.f32 %v401_v13, 1e-08  ;;  %v391_v37 = vsel %vm390_vm2, %v1290_v63, %v389_v18  ;;  %v410_v60 = vmul.f32 %v797_v15, %v1301_v23  ;;  %v1363_v2 = vpop.xlane.xlu1 %292  ;;  %816 = vrsqrt.f32 %v1340_v44 }
  0xcd   :  { %v1365_v19 = vpop.xlane.xlu0 %289  ;;  %v801_v6 = vpop.eup %800  ;;  %v600_v57 = vmul.f32 %v799_v17, %v1253_v12  ;;  %v394_v46 = vsel %vm392_vm3, %v393_v56, %v391_v37  ;;  %v435_v37 = vand.u32 2147483648, %v1342_v47  ;;  %vm453_vm15 = vcmp.eq.f32.partialorder %v1363_v2, inf }
  0xce   :  { %v803_v48 = vpop.eup %802  ;;  %v598_v1 = vmul.f32 %v801_v6, %v1259_v22  ;;  %818 = vrcp.f32 %v571_v24  ;;  %v570_v45 = vmax.f32 %v394_v46, 1e-08  ;;  %v412_v7 = vsel %vm411_vm4, %v1301_v23, %v410_v60 }
  0xcf   :  { %662 = vst.msk [vmem:[%s1815_s2 + $0x10] sm:$0xff] %vm1816_vm11, %v600_v57  ;;  %v415_v12 = vsel %vm413_vm5, %v414_v36, %v412_v7  ;;  %v403_v63 = vmul.f32 %v803_v48, %v1303_v3  ;;  %820 = vrsqrt.f32 %v1342_v47  ;;  %v407_v23 = vand.u32 2147483648, %v1303_v3 }
  0xd0   :  { %v805_v4 = vpop.eup %804  ;;  %661 = vst.msk [vmem:[%s1815_s2 + $0x8] sm:$0xff] %vm1816_vm11, %v598_v1  ;;  %822 = vrcp.f32 %v570_v45  ;;  %v573_v22 = vmax.f32 %v415_v12, 1e-08  ;;  %v1388_v61 = vpop.xlane.xlu1 %298  ;;  %v456_v57 = vand.u32 2147483648, %v1363_v2  ;;  %vm446_vm0 = vcmp.eq.f32.partialorder %v1365_v19, inf }
  0xd1   :  { %v1390_v62 = vpop.xlane.xlu0 %295  ;;  %v807_v30 = vpop.eup %806  ;;  %v604_v26 = vmul.f32 %v805_v4, %v1263_v38  ;;  %v405_v25 = vsel %vm404_vm6, %v1303_v3, %v403_v63  ;;  %824 = vrsqrt.f32 %v1363_v2  ;;  %v449_v46 = vand.u32 2147483648, %v1365_v19 }
  0xd2   :  { %v809_v31 = vpop.eup %808  ;;  %v602_v34 = vmul.f32 %v807_v30, %v1257_v21  ;;  %826 = vrcp.f32 %v573_v22  ;;  %v408_v29 = vsel %vm406_vm7, %v407_v23, %v405_v25  ;;  %v428_v21 = vand.u32 2147483648, %v1320_v8 }
  0xd3   :  { %v811_v32 = vpop.eup %810  ;;  %664 = vst.msk [vmem:[%s1815_s2 + $0x20] sm:$0xff] %vm1816_vm11, %v604_v26  ;;  %v572_v50 = vmax.f32 %v408_v29, 1e-08  ;;  %v424_v38 = vmul.f32 %v809_v31, %v1320_v8  ;;  %828 = vrsqrt.f32 %v1365_v19  ;;  %vm467_vm1 = vcmp.eq.f32.partialorder %v1388_v61, inf }
  0xd4   :  { %v813_v3 = vpop.eup %812  ;;  %663 = vst.msk [vmem:[%s1815_s2 + $0x18] sm:$0xff] %vm1816_vm11, %v602_v34  ;;  %v417_v51 = vmul.f32 %v811_v32, %v1322_v9  ;;  %v1412_v16 = vpop.xlane.xlu1 %304  ;;  %v470_v48 = vand.u32 2147483648, %v1388_v61  ;;  %vm460_vm2 = vcmp.eq.f32.partialorder %v1390_v62, inf  ;;  %v463_v22 = vand.u32 2147483648, %v1390_v62 }
  0xd5   :  { %v1414_v10 = vpop.xlane.xlu0 %301  ;;  %v815_v11 = vpop.eup %814  ;;  %v608_v5 = vmul.f32 %v813_v3, %v1267_v40  ;;  %830 = vrcp.f32 %v572_v50  ;;  %v426_v58 = vsel %vm425_vm8, %v1320_v8, %v424_v38  ;;  %vm481_vm3 = vcmp.eq.f32.partialorder %v1412_v16, inf }
  0xd6   :  { %v606_v59 = vmul.f32 %v815_v11, %v1261_v33  ;;  %v429_v14 = vsel %vm427_vm9, %v428_v21, %v426_v58  ;;  %v419_v20 = vsel %vm418_vm10, %v1322_v9, %v417_v51  ;;  %v817_v27 = vpop.eup %816  ;;  %832 = vrsqrt.f32 %v1388_v61 }
  0xd7   :  { %666 = vst.msk [vmem:[%s1815_s2 + $0x30] sm:$0xff] %vm1816_vm11, %v608_v5  ;;  %v575_v28 = vmax.f32 %v429_v14, 1e-08  ;;  %v422_v40 = vsel %vm420_vm12, %v421_v49, %v419_v20  ;;  %834 = vrsqrt.f32 %v1390_v62  ;;  %v438_v56 = vmul.f32 %v817_v27, %v1340_v44 }
  0xd8   :  { %v819_v8 = vpop.eup %818  ;;  %665 = vst.msk [vmem:[%s1815_s2 + $0x28] sm:$0xff] %vm1816_vm11, %v606_v59  ;;  %v574_v33 = vmax.f32 %v422_v40, 1e-08  ;;  %v1432_v9 = vpop.xlane.xlu1 %310  ;;  %vm474_vm4 = vcmp.eq.f32.partialorder %v1414_v10, inf  ;;  %v477_v26 = vand.u32 2147483648, %v1414_v10  ;;  %vm434_vm5 = vcmp.eq.f32.partialorder %v1342_v47, 0.0 }
  0xd9   :  { %v1434_v52 = vpop.xlane.xlu0 %307  ;;  %v821_v35 = vpop.eup %820  ;;  %v612_v55 = vmul.f32 %v819_v8, %v1271_v42  ;;  %836 = vrcp.f32 %v575_v28  ;;  %v442_v42 = vand.u32 2147483648, %v1340_v44  ;;  %v1476_v45 = vsel %vm439_vm13, %v1340_v44, %v438_v56 }
  0xda   :  { %v823_v43 = vpop.eup %822  ;;  %838 = vrcp.f32 %v574_v33  ;;  %v431_v6 = vmul.f32 %v821_v35, %v1342_v47  ;;  %vm448_vm6 = vcmp.eq.f32.partialorder %v1365_v19, 0.0  ;;  %vm495_vm7 = vcmp.eq.f32.partialorder %v1432_v9, inf }
  0xdb   :  { %v825_v18 = vpop.eup %824  ;;  %668 = vst.msk [vmem:[%s1815_s2 + $0x40] sm:$0xff] %vm1816_vm11, %v612_v55  ;;  %v610_v15 = vmul.f32 %v823_v43, %v1265_v39  ;;  %840 = vrsqrt.f32 %v1412_v16  ;;  %v498_v34 = vand.u32 2147483648, %v1432_v9  ;;  %vm488_vm8 = vcmp.eq.f32.partialorder %v1434_v52, inf }
  0xdc   :  { %v827_v13 = vpop.eup %826  ;;  %842 = vrsqrt.f32 %v1414_v10  ;;  %v1448_v17 = vpop.xlane.xlu1 %316  ;;  %v1495_v30 = vsel %vm432_vm14, %v1342_v47, %v431_v6  ;;  %vm441_vm10 = vcmp.eq.f32.partialorder %v1340_v44, 0.0  ;;  %vm455_vm12 = vcmp.eq.f32.partialorder %v1363_v2, 0.0 }
  0xdd   :  { %v1450_v24 = vpop.xlane.xlu0 %313  ;;  %667 = vst.msk [vmem:[%s1815_s2 + $0x38] sm:$0xff] %vm1816_vm11, %v610_v15  ;;  %v616_v39 = vmul.f32 %v827_v13, %v1275_v54  ;;  %844 = vrsqrt.f32 %v1432_v9  ;;  %v829_v60 = vpop.eup %828  ;;  %v452_v54 = vmul.f32 %v825_v18, %v1363_v2  ;;  %vm509_vm9 = vcmp.eq.f32.partialorder %v1448_v17, inf }
  0xde   :  { %846 = vrsqrt.f32 %v1434_v52  ;;  %v445_v4 = vmul.f32 %v829_v60, %v1365_v19  ;;  %vm462_vm13 = vcmp.eq.f32.partialorder %v1390_v62, 0.0  ;;  %vm502_vm14 = vcmp.eq.f32.partialorder %v1450_v24, inf }
  0xdf   :  { %v831_v36 = vpop.eup %830  ;;  %670 = vst.msk [vmem:[%s1815_s2 + $0x50] sm:$0xff] %vm1816_vm11, %v616_v39  ;;  %848 = vrsqrt.f32 %v1448_v17  ;;  %v1504_v31 = vsel %vm453_vm15, %v1363_v2, %v452_v54  ;;  %v505_v20 = vand.u32 2147483648, %v1450_v24 }
  0xe0   :  { %v614_v1 = vmul.f32 %v831_v36, %v1269_v41  ;;  %v1480_v7 = vpop.xlane.xlu1 %322  ;;  %v833_v63 = vpop.eup %832  ;;  %v484_v41 = vand.u32 2147483648, %v1412_v16  ;;  %850 = vrsqrt.f32 %v1450_v24  ;;  %v447_v11 = vsel %vm446_vm0, %v1365_v19, %v445_v4 }
  0xe1   :  { %v1482_v12 = vpop.xlane.xlu0 %319  ;;  %v835_v23 = vpop.eup %834  ;;  %852 = vrsqrt.f32 %v1480_v7  ;;  %v466_v50 = vmul.f32 %v833_v63, %v1388_v61  ;;  %vm523_vm15 = vcmp.eq.f32.partialorder %v1480_v7, inf  ;;  %v526_v40 = vand.u32 2147483648, %v1480_v7 }
  0xe2   :  { %669 = vst.msk [vmem:[%s1815_s2 + $0x48] sm:$0xff] %vm1816_vm11, %v614_v1  ;;  %854 = vrsqrt.f32 %v1482_v12  ;;  %v459_v5 = vmul.f32 %v835_v23, %v1390_v62  ;;  %v519_v43 = vand.u32 2147483648, %v1482_v12  ;;  %v436_v4 = vsel %vm434_vm5, %v435_v37, %v1495_v30 }
  0xe3   :  { %v837_v25 = vpop.eup %836  ;;  %v1546_v27 = vsel %vm467_vm1, %v1388_v61, %v466_v50  ;;  %vm516_vm1 = vcmp.eq.f32.partialorder %v1482_v12, inf }
  0xe4   :  { %v839_v29 = vpop.eup %838  ;;  %v620_v32 = vmul.f32 %v837_v25, %v1277_v0  ;;  %v1514_v38 = vpop.xlane.xlu1 %328  ;;  %v491_v0 = vand.u32 2147483648, %v1434_v52  ;;  %v461_v55 = vsel %vm460_vm2, %v1390_v62, %v459_v5  ;;  %v450_v25 = vsel %vm448_vm6, %v449_v46, %v447_v11 }
  0xe5   :  { %v1516_v3 = vpop.xlane.xlu0 %325  ;;  %v841_v21 = vpop.eup %840  ;;  %v618_v51 = vmul.f32 %v839_v29, %v1273_v53  ;;  %v512_v53 = vand.u32 2147483648, %v1448_v17  ;;  %856 = vrsqrt.f32 %v1514_v38  ;;  %vm537_vm2 = vcmp.eq.f32.partialorder %v1514_v38, inf }
  0xe6   :  { %v843_v58 = vpop.eup %842  ;;  %672 = vst.msk [vmem:[%s1815_s2 + $0x60] sm:$0xff] %vm1816_vm11, %v620_v32  ;;  %v480_v49 = vmul.f32 %v841_v21, %v1412_v16  ;;  %858 = vrsqrt.f32 %v1516_v3  ;;  %v540_v56 = vand.u32 2147483648, %v1514_v38  ;;  %vm530_vm0 = vcmp.eq.f32.partialorder %v1516_v3, inf }
  0xe7   :  { %v845_v59 = vpop.eup %844  ;;  %671 = vst.msk [vmem:[%s1815_s2 + $0x58] sm:$0xff] %vm1816_vm11, %v618_v51  ;;  %v473_v14 = vmul.f32 %v843_v58, %v1414_v10  ;;  %v533_v6 = vand.u32 2147483648, %v1516_v3  ;;  %vm490_vm11 = vcmp.eq.f32.partialorder %v1434_v52, 0.0  ;;  %v576_v21 = vmax.f32 %v436_v4, 1e-08 }
  0xe8   :  { %v494_v28 = vmul.f32 %v845_v59, %v1432_v9  ;;  %v1551_v8 = vpop.xlane.xlu1 %334  ;;  %v847_v35 = vpop.eup %846  ;;  %v1566_v15 = vsel %vm481_vm3, %v1412_v16, %v480_v49  ;;  %vm483_vm3 = vcmp.eq.f32.partialorder %v1412_v16, 0.0  ;;  %v578_v5 = vmax.f32 %v450_v25, 1e-08 }
  0xe9   :  { %v1553_v33 = vpop.xlane.xlu0 %331  ;;  %860 = vrsqrt.f32 %v1551_v8  ;;  %v849_v18 = vpop.eup %848  ;;  %v487_v13 = vmul.f32 %v847_v35, %v1434_v52  ;;  %v475_v39 = vsel %vm474_vm4, %v1414_v10, %v473_v14  ;;  %vm504_vm4 = vcmp.eq.f32.partialorder %v1450_v24, 0.0 }
  0xea   :  { %v508_v60 = vmul.f32 %v849_v18, %v1448_v17  ;;  %862 = vrsqrt.f32 %v1553_v33  ;;  %v851_v36 = vpop.eup %850  ;;  %v1582_v54 = vsel %vm495_vm7, %v1432_v9, %v494_v28  ;;  %v554_v1 = vand.u32 2147483648, %v1551_v8 }
  0xeb   :  { %v853_v29 = vpop.eup %852  ;;  %v489_v32 = vsel %vm488_vm8, %v1434_v52, %v487_v13  ;;  %v501_v50 = vmul.f32 %v851_v36, %v1450_v24  ;;  %vm551_vm7 = vcmp.eq.f32.partialorder %v1551_v8, inf  ;;  %v547_v46 = vand.u32 2147483648, %v1553_v33 }
  0xec   :  { %v1587_v63 = vpop.xlane.xlu1 %155  ;;  %v855_v47 = vpop.eup %854  ;;  %v1610_v19 = vsel %vm509_vm9, %v1448_v17, %v508_v60  ;;  %v522_v37 = vmul.f32 %v853_v29, %v1480_v7  ;;  %vm544_vm6 = vcmp.eq.f32.partialorder %v1553_v33, inf  ;;  %vm511_vm8 = vcmp.eq.f32.partialorder %v1448_v17, 0.0 }
  0xed   :  { %v1594_v23 = vpop.xlane.xlu0 %337  ;;  %v503_v51 = vsel %vm502_vm14, %v1450_v24, %v501_v50  ;;  %v515_v11 = vmul.f32 %v855_v47, %v1482_v12  ;;  %vm518_vm9 = vcmp.eq.f32.partialorder %v1482_v12, 0.0  ;;  %vm532_vm5 = vcmp.eq.f32.partialorder %v1516_v3, 0.0 }
  0xee   :  { %864 = vrsqrt.f32 %v1594_v23  ;;  %v561_v30 = vand.u32 2147483648, %v1594_v23  ;;  %v1624_v49 = vsel %vm523_vm15, %v1480_v7, %v522_v37  ;;  %v443_v14 = vsel %vm441_vm10, %v442_v42, %v1476_v45 }
  0xef   :  { %866 = vrcp.f32 %v576_v21  ;;  %v857_v58 = vpop.eup %856  ;;  %v464_v35 = vsel %vm462_vm13, %v463_v22, %v461_v55  ;;  %v457_v18 = vsel %vm455_vm12, %v456_v57, %v1504_v31  ;;  %v517_v60 = vsel %vm516_vm1, %v1482_v12, %v515_v11 }
  0xf0   :  { %v1628_v59 = vpop.xlane.xlu1 %161  ;;  %v859_v13 = vpop.eup %858  ;;  %v536_v44 = vmul.f32 %v857_v58, %v1514_v38  ;;  %vm558_vm10 = vcmp.eq.f32.partialorder %v1594_v23, inf  ;;  %868 = vrcp.f32 %v578_v5  ;;  %v577_v42 = vmax.f32 %v443_v14, 1e-08 }
  0xf1   :  { %v1635_v28 = vpop.xlane.xlu0 %158  ;;  %vm525_vm14 = vcmp.eq.f32.partialorder %v1480_v7, 0.0  ;;  %v529_v62 = vmul.f32 %v859_v13, %v1516_v3  ;;  %v580_v45 = vmax.f32 %v464_v35, 1e-08  ;;  %v579_v22 = vmax.f32 %v457_v18, 1e-08 }
  0xf2   :  { %vm1817_vm12 = vcmp.eq.f32.partialorder %v1414_v10, 0.0  ;;  %v538_v31 = vsel %vm537_vm2, %v1514_v38, %v536_v44  ;;  %vm546_vm13 = vcmp.eq.f32.partialorder %v1553_v33, 0.0  ;;  %870 = vrcp.f32 %v577_v42 }
  0xf3   :  { %v478_v2 = vsel %vm1817_vm12, %v477_v26, %v475_v39  ;;  %v861_v57 = vpop.eup %860  ;;  %vm1818_vm15 = vcmp.eq.f32.partialorder %v1388_v61, 0.0  ;;  %vm539_vm1 = vcmp.eq.f32.partialorder %v1514_v38, 0.0  ;;  %v531_v10 = vsel %vm530_vm0, %v1516_v3, %v529_v62 }
  0xf4   :  { %v582_v55 = vmax.f32 %v478_v2, 1e-08  ;;  %v471_v36 = vsel %vm1818_vm15, %v470_v48, %v1546_v27  ;;  %v550_v26 = vmul.f32 %v861_v57, %v1551_v8  ;;  %v168_v39 = vpop.xlane.xlu1 %167  ;;  %872 = vrcp.f32 %v580_v45  ;;  %v863_v29 = vpop.eup %862 }
  0xf5   :  { %v165_v4 = vpop.xlane.xlu0 %164  ;;  %v581_v25 = vmax.f32 %v471_v36, 1e-08  ;;  %874 = vrcp.f32 %v579_v22  ;;  %v492_v61 = vsel %vm490_vm11, %v491_v0, %v489_v32  ;;  %v485_v48 = vsel %vm483_vm3, %v484_v41, %v1566_v15 }
  0xf6   :  { %v506_v27 = vsel %vm504_vm4, %v505_v20, %v503_v51  ;;  %v552_v50 = vsel %vm551_vm7, %v1551_v8, %v550_v26  ;;  %vm553_vm0 = vcmp.eq.f32.partialorder %v1551_v8, 0.0  ;;  %v543_v52 = vmul.f32 %v863_v29, %v1553_v33 }
  0xf7   :  { %876 = vrcp.f32 %v582_v55  ;;  %v584_v0 = vmax.f32 %v492_v61, 1e-08  ;;  %v583_v21 = vmax.f32 %v485_v48, 1e-08  ;;  %v586_v16 = vmax.f32 %v506_v27, 1e-08 }
  0xf8   :  { %v865_v32 = vpop.eup %864  ;;  %878 = vrcp.f32 %v581_v25  ;;  %vm1819_vm11 = vcmp.eq.f32.partialorder %v1432_v9, 0.0  ;;  %v545_v41 = vsel %vm544_vm6, %v1553_v33, %v543_v52  ;;  %v174_v15 = vpop.xlane.xlu1 %173  ;;  %v520_v11 = vsel %vm518_vm9, %v519_v43, %v517_v60 }
  0xf9   :  { %v499_v24 = vsel %vm1819_vm11, %v498_v34, %v1582_v54  ;;  %v557_v20 = vmul.f32 %v865_v32, %v1594_v23  ;;  %v171_v47 = vpop.xlane.xlu0 %170  ;;  %880 = vrcp.f32 %v584_v0  ;;  %v867_v51 = vpop.eup %866  ;;  %v513_v9 = vsel %vm511_vm8, %v512_v53, %v1610_v19 }
  0xfa   :  { %v585_v37 = vmax.f32 %v499_v24, 1e-08  ;;  %882 = vrcp.f32 %v583_v21  ;;  %v534_v34 = vsel %vm532_vm5, %v533_v6, %v531_v10  ;;  %v622_v54 = vmul.f32 %v867_v51, %v1587_v63  ;;  %v869_v43 = vpop.eup %868 }
  0xfb   :  { %v559_v5 = vsel %vm558_vm10, %v1594_v23, %v557_v20  ;;  %884 = vrcp.f32 %v586_v16  ;;  %v588_v12 = vmax.f32 %v520_v11, 1e-08  ;;  %v587_v58 = vmax.f32 %v513_v9, 1e-08 }
  0xfc   :  { %886 = vrcp.f32 %v585_v37  ;;  %v590_v14 = vmax.f32 %v534_v34, 1e-08  ;;  %v527_v17 = vsel %vm525_vm14, %v526_v40, %v1624_v49  ;;  %vm1820_vm2 = vcmask 7168   ;;  %v180_v53 = vpop.xlane.xlu1 %179  ;;  %v871_v35 = vpop.eup %870 }
  0xfd   :  { %673 = vst.msk [vmem:[%s1815_s2 + $0x68] sm:$0xff] %vm1820_vm2, %v622_v54  ;;  %v626_v3 = vmul.f32 %v869_v43, %v1628_v59  ;;  %v177_v6 = vpop.xlane.xlu0 %176  ;;  %888 = vrcp.f32 %v588_v12  ;;  %v589_v63 = vmax.f32 %v527_v17, 1e-08  ;;  %v548_v19 = vsel %vm546_vm13, %v547_v46, %v545_v41  ;;  %vm1821_vm4 = vmmov %vm1820_vm2 }
  0xfe   :  { %vm560_vm3 = vcmp.eq.f32.partialorder %v1594_v23, 0.0  ;;  %890 = vrcp.f32 %v587_v58  ;;  %v592_v7 = vmax.f32 %v548_v19, 1e-08  ;;  %v541_v40 = vsel %vm539_vm1, %v540_v56, %v538_v31  ;;  %v873_v49 = vpop.eup %872  ;;  %vm1822_vm7 = vmmov %vm1820_vm2 }
  0xff   :  { %675 = vst.msk [vmem:[%s1815_s2 + $0x78] sm:$0xff] %vm1821_vm4, %v626_v3  ;;  %v624_v59 = vmul.f32 %v871_v35, %v1635_v28  ;;  %892 = vrcp.f32 %v590_v14  ;;  %v591_v33 = vmax.f32 %v541_v40, 1e-08  ;;  %v562_v46 = vsel %vm560_vm3, %v561_v30, %v559_v5  ;;  %v875_v18 = vpop.eup %874  ;;  %vm1823_vm5 = vmmov %vm1820_vm2 }
 0x100   :  { %v630_v13 = vmul.f32 %v873_v49, %v168_v39  ;;  %894 = vrcp.f32 %v589_v63  ;;  %v555_v38 = vsel %vm553_vm0, %v554_v1, %v552_v50  ;;  %v628_v28 = vmul.f32 %v875_v18, %v165_v4  ;;  %v186_v60 = vpop.xlane.xlu1 %185  ;;  %vm1824_vm6 = vmmov %vm1820_vm2 }
 0x101   :  { %v877_v56 = vpop.eup %876  ;;  %674 = vst.msk [vmem:[%s1815_s2 + $0x70] sm:$0xff] %vm1822_vm7, %v624_v59  ;;  %v183_v44 = vpop.xlane.xlu0 %182  ;;  %896 = vrcp.f32 %v592_v7  ;;  %v594_v30 = vmax.f32 %v562_v46, 1e-08  ;;  %v593_v62 = vmax.f32 %v555_v38, 1e-08  ;;  %vm1825_vm8 = vmmov %vm1820_vm2 }
 0x102   :  { %v879_v42 = vpop.eup %878  ;;  %677 = vst.msk [vmem:[%s1815_s2 + $0x88] sm:$0xff] %vm1823_vm5, %v630_v13  ;;  %v634_v23 = vmul.f32 %v877_v56, %v174_v15  ;;  %898 = vrcp.f32 %v591_v33  ;;  %vm1826_vm9 = vmmov %vm1820_vm2 }
 0x103   :  { %v881_v8 = vpop.eup %880  ;;  %676 = vst.msk [vmem:[%s1815_s2 + $0x80] sm:$0xff] %vm1824_vm6, %v628_v28  ;;  %v632_v1 = vmul.f32 %v879_v42, %v171_v47  ;;  %vm1827_vm10 = vmmov %vm1820_vm2  ;;  %900 = vrcp.f32 %v594_v30 }
 0x104   :  { %v883_v45 = vpop.eup %882  ;;  %679 = vst.msk [vmem:[%s1815_s2 + $0x98] sm:$0xff] %vm1825_vm8, %v634_v23  ;;  %v638_v22 = vmul.f32 %v881_v8, %v180_v53  ;;  %v192_v31 = vpop.xlane.xlu1 %191  ;;  %vm1828_vm14 = vmmov %vm1820_vm2  ;;  %902 = vrcp.f32 %v593_v62 }
 0x105   :  { %v885_v2 = vpop.eup %884  ;;  %678 = vst.msk [vmem:[%s1815_s2 + $0x90] sm:$0xff] %vm1826_vm9, %v632_v1  ;;  %v636_v57 = vmul.f32 %v883_v45, %v177_v6  ;;  %v189_v55 = vpop.xlane.xlu0 %188  ;;  %vm1829_vm12 = vmmov %vm1820_vm2 }
 0x106   :  { %v887_v36 = vpop.eup %886  ;;  %681 = vst.msk [vmem:[%s1815_s2 + $0xa8] sm:$0xff] %vm1827_vm10, %v638_v22  ;;  %v642_v10 = vmul.f32 %v885_v2, %v186_v60  ;;  %vm1830_vm13 = vmmov %vm1820_vm2 }
 0x107   :  { %v889_v26 = vpop.eup %888  ;;  %680 = vst.msk [vmem:[%s1815_s2 + $0xa0] sm:$0xff] %vm1828_vm14, %v636_v57  ;;  %v640_v39 = vmul.f32 %v887_v36, %v183_v44  ;;  %vm1831_vm15 = vmmov %vm1820_vm2 }
 0x108   :  { %v891_v4 = vpop.eup %890  ;;  %683 = vst.msk [vmem:[%s1815_s2 + $0xb8] sm:$0xff] %vm1829_vm12, %v642_v10  ;;  %v646_v25 = vmul.f32 %v889_v26, %v192_v31  ;;  %v198_v48 = vpop.xlane.xlu1 %197  ;;  %vm1832_vm1 = vmmov %vm1820_vm2 }
 0x109   :  { %v893_v29 = vpop.eup %892  ;;  %682 = vst.msk [vmem:[%s1815_s2 + $0xb0] sm:$0xff] %vm1830_vm13, %v640_v39  ;;  %v644_v61 = vmul.f32 %v891_v4, %v189_v55  ;;  %v195_v27 = vpop.xlane.xlu0 %194  ;;  %vm1833_vm0 = vmmov %vm1832_vm1 }
 0x10a   :  { %v895_v50 = vpop.eup %894  ;;  %685 = vst.msk [vmem:[%s1815_s2 + $0xc8] sm:$0xff] %vm1831_vm15, %v646_v25  ;;  %v650_v52 = vmul.f32 %v893_v29, %v198_v48  ;;  %vm1834_vm11 = vmmov %vm1833_vm0 }
 0x10b   :  { %684 = vst.msk [vmem:[%s1815_s2 + $0xc0] sm:$0xff] %vm1832_vm1, %v644_v61  ;;  %v648_v0 = vmul.f32 %v895_v50, %v195_v27  ;;  %v897_v32 = vpop.eup %896  ;;  %vm1835_vm2 = vmmov %vm1833_vm0 }
 0x10c   :  { %687 = vst.msk [vmem:[%s1815_s2 + $0xd8] sm:$0xff] %vm1833_vm0, %v650_v52  ;;  %v899_v21 = vpop.eup %898  ;;  %v204_v16 = vpop.xlane.xlu1 %203  ;;  %vm1836_vm3 = vmmov %vm1833_vm0 }
 0x10d   :  { %686 = vst.msk [vmem:[%s1815_s2 + $0xd0] sm:$0xff] %vm1834_vm11, %v648_v0  ;;  %v201_v24 = vpop.xlane.xlu0 %200  ;;  %v654_v41 = vmul.f32 %v897_v32, %v204_v16  ;;  %v901_v15 = vpop.eup %900  ;;  %vm1837_vm4 = vmmov %vm1833_vm0 }
 0x10e   :  { %v652_v20 = vmul.f32 %v899_v21, %v201_v24  ;;  %v903_v47 = vpop.eup %902  ;;  %vm1838_vm7 = vmmov %vm1833_vm0 }
 0x10f   :  { %689 = vst.msk [vmem:[%s1815_s2 + $0xe8] sm:$0xff] %vm1835_vm2, %v654_v41 }
 0x110   :  { %688 = vst.msk [vmem:[%s1815_s2 + $0xe0] sm:$0xff] %vm1836_vm3, %v652_v20  ;;  %v210_v37 = vpop.xlane.xlu1 %209 }
 0x111   :  { %v207_v51 = vpop.xlane.xlu0 %206  ;;  %v658_v11 = vmul.f32 %v901_v15, %v210_v37 }
 0x112   :  { %v656_v9 = vmul.f32 %v903_v47, %v207_v51 }
 0x113   :  { %691 = vst.msk [vmem:[%s1815_s2 + $0xf8] sm:$0xff] %vm1837_vm4, %v658_v11 }
 0x114   :  { %690 = vst.msk [vmem:[%s1815_s2 + $0xf0] sm:$0xff] %vm1838_vm7, %v656_v9 }

// kernel: base_extend_sam_forward.7
= control target key start
LH: loop header
LB: loop body
LE: loop exit
PB: predicated region body
PF: predicated region fallthrough
CT: control target
= control target key end

     0   :  { %v25_v0 = vlaneseq  ;;  %v510_v1 = vmov 1966171168   ;;  %s624_s0 = inlined_call_operand.vmem [shape: bf16[256,32], index: 0, kind: input, shape index: {}]   ;;  %s625_s1 = inlined_call_operand.vmem [shape: bf16[1,256], index: 1, kind: input, shape index: {}]   ;;  %s626_s2 = inlined_call_operand.hbm [shape: bf16[1,256,32], index: 2, kind: output, shape index: {}]  }
   0x1   :  { %v23_v2 = vunpack.c.l.s4 %v510_v1  ;;  %v417_v3 = vld.sshfl [vmem:[%s625_s1] sm:$0x11 pattern:$0x75316420] }
   0x2   :  { %v26_v4 = vshrl.u32 %v25_v0, 7  ;;  %v21_v11 = vcombine.high %v417_v3, %v417_v3 }
   0x3   :  { %v24_v5 = vunpack.c.0.s8 %v23_v2 }
   0x4   :  { %v41_v7 = vsub.s32 0, %v26_v4 }
   0x5   :  { %v27_v6 = vsub.s32 %v24_v5, %v26_v4 }
   0x7   :  { %v28_v8 = vrot.slane %v417_v3, %v27_v6 }
   0x9   :  { %v37_v9 = vpack.i.b16 %v28_v8, %v28_v8 }
   0xb   :  { %v42_v10 = vrot.slane %v37_v9, %v41_v7 }
   0xd   :  { %52 = vbcast.lane.c.b16.xlu1 %v42_v10, 288  ;;  %44 = vbcast.lane.c.b16.xlu0 %v42_v10, 256 }
   0xe   :  { %7 = vsyncpa [#allocation3], 0  ;;  %v35_v12 = vrot.slane %v21_v11, %v27_v6  ;;  %v470_v15 = vld [vmem:[%s624_s0 + $0x10] sm:$0xff]   ;;  %v471_v16 = vld [vmem:[%s624_s0] sm:$0xff]   ;;  %vm368_vm0 = vcmask 257024   ;;  %s511_s13 = smov [#allocation2]  }
   0xf   :  { %v472_v21 = vld [vmem:[%s624_s0 + $0x18] sm:$0xff]   ;;  %v473_v22 = vld [vmem:[%s624_s0 + $0x8] sm:$0xff]   ;;  %v475_v32 = vld [vmem:[%s624_s0 + $0x20] sm:$0xff]   ;;  %s406_s14 = sshll.u32 %s511_s13, 4  ;;  %s407_s14 = int_to_ptr.vmem [resolvable:$true] %s406_s14 }
  0x10   :  { %v75_v13 = vpack.i.b16 %v35_v12, %v35_v12  ;;  %v474_v31 = vld [vmem:[%s624_s0 + $0x28] sm:$0xff]   ;;  %v476_v41 = vld [vmem:[%s624_s0 + $0x38] sm:$0xff]   ;;  %v477_v42 = vld [vmem:[%s624_s0 + $0x30] sm:$0xff]   ;;  %p491_p1 = scmp.lt.s32.totalorder %s407_s14, %s407_s14 }
  0x11   :  { %56 = vbcast.lane.c.b16.xlu1 %v42_v10, 304  ;;  %48 = vbcast.lane.c.b16.xlu0 %v42_v10, 272  ;;  %v478_v51 = vld [vmem:[%s624_s0 + $0x48] sm:$0xff]   ;;  %v479_v52 = vld [vmem:[%s624_s0 + $0x40] sm:$0xff]   ;;  %v480_v61 = vld [vmem:[%s624_s0 + $0x58] sm:$0xff]  }
  0x12   :  { %v80_v14 = vrot.slane %v75_v13, %v41_v7  ;;  %v481_v62 = vld [vmem:[%s624_s0 + $0x50] sm:$0xff]   ;;  %v482_v7 = vld [vmem:[%s624_s0 + $0x68] sm:$0xff]   ;;  %v483_v8 = vld [vmem:[%s624_s0 + $0x60] sm:$0xff]  }
  0x15   :  { %64 = vbcast.lane.c.b16.xlu1 %v42_v10, 336  ;;  %60 = vbcast.lane.c.b16.xlu0 %v42_v10, 320 }
  0x19   :  { %72 = vbcast.lane.c.b16.xlu1 %v42_v10, 368  ;;  %68 = vbcast.lane.c.b16.xlu0 %v42_v10, 352 }
  0x1d   :  { %86 = vbcast.lane.c.b16.xlu1 %v80_v14, 272  ;;  %82 = vbcast.lane.c.b16.xlu0 %v80_v14, 256 }
  0x21   :  { %94 = vbcast.lane.c.b16.xlu1 %v80_v14, 304  ;;  %90 = vbcast.lane.c.b16.xlu0 %v80_v14, 288 }
  0x25   :  { %102 = vbcast.lane.c.b16.xlu1 %v80_v14, 336  ;;  %98 = vbcast.lane.c.b16.xlu0 %v80_v14, 320 }
  0x29   :  { %110 = vbcast.lane.c.b16.xlu1 %v80_v14, 368  ;;  %106 = vbcast.lane.c.b16.xlu0 %v80_v14, 352 }
  0x7f   :  { %v53_v17 = vpop.permute.xlu1 %52  ;;  %v45_v18 = vpop.permute.xlu0 %44 }
  0x80   :  { %v242_v19 = vmul.bf16 %v470_v15, %v53_v17  ;;  %v240_v20 = vmul.bf16 %v471_v16, %v45_v18  ;;  %v484_v17 = vld [vmem:[%s624_s0 + $0x78] sm:$0xff]   ;;  %v485_v18 = vld [vmem:[%s624_s0 + $0x70] sm:$0xff]   ;;  %s486_s0 = scalar_lea.vmem %s407_s14, 2048 }
  0x81   :  { %p487_p0 = scmp.ne.s32.totalorder %s407_s14, %s486_s0  ;;  %p492_p2 = scmp.lt.s32.totalorder %s486_s0, %s486_s0 }
  0x82   :  { %v438_v23 = vcombine.low %v242_v19, %v242_v19  ;;  %v439_v24 = vcombine.high %v242_v19, %v242_v19  ;;  %v434_v25 = vcombine.low %v240_v20, %v240_v20  ;;  %v435_v26 = vcombine.high %v240_v20, %v240_v20 }
  0x83   :  { %v57_v27 = vpop.permute.xlu1 %56  ;;  %v49_v28 = vpop.permute.xlu0 %48  ;;  %p493_p3 = por %p492_p2, %p491_p1 }
  0x84   :  { %373 = vst.msk [vmem:[#allocation2 + $0x10] sm:$0xf] %vm368_vm0, %v438_v23  ;;  %374 = vst.msk [vmem:[#allocation2 + $0x14] sm:$0xf] %vm368_vm0, %v439_v24  ;;  %v243_v29 = vmul.bf16 %v472_v21, %v57_v27  ;;  %v241_v30 = vmul.bf16 %v473_v22, %v49_v28 }
  0x85   :  { %369 = vst.msk [vmem:[#allocation2] sm:$0xf] %vm368_vm0, %v434_v25  ;;  %370 = vst.msk [vmem:[#allocation2 + $0x4] sm:$0xf] %vm368_vm0, %v435_v26  ;;  %p494_p4 = pnand %p493_p3, %p487_p0 }
  0x86   :  { %v440_v33 = vcombine.low %v243_v29, %v243_v29  ;;  %v441_v34 = vcombine.high %v243_v29, %v243_v29  ;;  %v436_v35 = vcombine.low %v241_v30, %v241_v30  ;;  %v437_v36 = vcombine.high %v241_v30, %v241_v30 }
  0x87   :  { %v65_v37 = vpop.permute.xlu1 %64  ;;  %v61_v38 = vpop.permute.xlu0 %60 }
  0x88   :  { %375 = vst.msk [vmem:[#allocation2 + $0x18] sm:$0xf] %vm368_vm0, %v440_v33  ;;  %376 = vst.msk [vmem:[#allocation2 + $0x1c] sm:$0xf] %vm368_vm0, %v441_v34  ;;  %v245_v39 = vmul.bf16 %v474_v31, %v65_v37  ;;  %v244_v40 = vmul.bf16 %v475_v32, %v61_v38 }
  0x89   :  { %371 = vst.msk [vmem:[#allocation2 + $0x8] sm:$0xf] %vm368_vm0, %v436_v35  ;;  %372 = vst.msk [vmem:[#allocation2 + $0xc] sm:$0xf] %vm368_vm0, %v437_v36 }
  0x8a   :  { %v444_v43 = vcombine.low %v245_v39, %v245_v39  ;;  %v445_v44 = vcombine.high %v245_v39, %v245_v39  ;;  %v442_v45 = vcombine.low %v244_v40, %v244_v40  ;;  %v443_v46 = vcombine.high %v244_v40, %v244_v40 }
  0x8b   :  { %v73_v47 = vpop.permute.xlu1 %72  ;;  %v69_v48 = vpop.permute.xlu0 %68 }
  0x8c   :  { %379 = vst.msk [vmem:[#allocation2 + $0x28] sm:$0xf] %vm368_vm0, %v444_v43  ;;  %380 = vst.msk [vmem:[#allocation2 + $0x2c] sm:$0xf] %vm368_vm0, %v445_v44  ;;  %v247_v49 = vmul.bf16 %v476_v41, %v73_v47  ;;  %v246_v50 = vmul.bf16 %v477_v42, %v69_v48 }
  0x8d   :  { %377 = vst.msk [vmem:[#allocation2 + $0x20] sm:$0xf] %vm368_vm0, %v442_v45  ;;  %378 = vst.msk [vmem:[#allocation2 + $0x24] sm:$0xf] %vm368_vm0, %v443_v46 }
  0x8e   :  { %v448_v53 = vcombine.low %v247_v49, %v247_v49  ;;  %v449_v54 = vcombine.high %v247_v49, %v247_v49  ;;  %v446_v55 = vcombine.low %v246_v50, %v246_v50  ;;  %v447_v56 = vcombine.high %v246_v50, %v246_v50 }
  0x8f   :  { %v87_v57 = vpop.permute.xlu1 %86  ;;  %v83_v58 = vpop.permute.xlu0 %82 }
  0x90   :  { %383 = vst.msk [vmem:[#allocation2 + $0x38] sm:$0xf] %vm368_vm0, %v448_v53  ;;  %384 = vst.msk [vmem:[#allocation2 + $0x3c] sm:$0xf] %vm368_vm0, %v449_v54  ;;  %v249_v59 = vmul.bf16 %v478_v51, %v87_v57  ;;  %v248_v60 = vmul.bf16 %v479_v52, %v83_v58 }
  0x91   :  { %381 = vst.msk [vmem:[#allocation2 + $0x30] sm:$0xf] %vm368_vm0, %v446_v55  ;;  %382 = vst.msk [vmem:[#allocation2 + $0x34] sm:$0xf] %vm368_vm0, %v447_v56 }
  0x92   :  { %v452_v63 = vcombine.low %v249_v59, %v249_v59  ;;  %v453_v0 = vcombine.high %v249_v59, %v249_v59  ;;  %v450_v1 = vcombine.low %v248_v60, %v248_v60  ;;  %v451_v2 = vcombine.high %v248_v60, %v248_v60 }
  0x93   :  { %v95_v3 = vpop.permute.xlu1 %94  ;;  %v91_v4 = vpop.permute.xlu0 %90 }
  0x94   :  { %387 = vst.msk [vmem:[#allocation2 + $0x48] sm:$0xf] %vm368_vm0, %v452_v63  ;;  %388 = vst.msk [vmem:[#allocation2 + $0x4c] sm:$0xf] %vm368_vm0, %v453_v0  ;;  %v251_v5 = vmul.bf16 %v480_v61, %v95_v3  ;;  %v250_v6 = vmul.bf16 %v481_v62, %v91_v4 }
  0x95   :  { %385 = vst.msk [vmem:[#allocation2 + $0x40] sm:$0xf] %vm368_vm0, %v450_v1  ;;  %386 = vst.msk [vmem:[#allocation2 + $0x44] sm:$0xf] %vm368_vm0, %v451_v2 }
  0x96   :  { %v456_v9 = vcombine.low %v251_v5, %v251_v5  ;;  %v457_v10 = vcombine.high %v251_v5, %v251_v5  ;;  %v454_v11 = vcombine.low %v250_v6, %v250_v6  ;;  %v455_v12 = vcombine.high %v250_v6, %v250_v6 }
  0x97   :  { %v103_v13 = vpop.permute.xlu1 %102  ;;  %v99_v14 = vpop.permute.xlu0 %98 }
  0x98   :  { %391 = vst.msk [vmem:[#allocation2 + $0x58] sm:$0xf] %vm368_vm0, %v456_v9  ;;  %392 = vst.msk [vmem:[#allocation2 + $0x5c] sm:$0xf] %vm368_vm0, %v457_v10  ;;  %v253_v15 = vmul.bf16 %v482_v7, %v103_v13  ;;  %v252_v16 = vmul.bf16 %v483_v8, %v99_v14 }
  0x99   :  { %389 = vst.msk [vmem:[#allocation2 + $0x50] sm:$0xf] %vm368_vm0, %v454_v11  ;;  %390 = vst.msk [vmem:[#allocation2 + $0x54] sm:$0xf] %vm368_vm0, %v455_v12 }
  0x9a   :  { %v460_v19 = vcombine.low %v253_v15, %v253_v15  ;;  %v461_v20 = vcombine.high %v253_v15, %v253_v15  ;;  %v458_v21 = vcombine.low %v252_v16, %v252_v16  ;;  %v459_v22 = vcombine.high %v252_v16, %v252_v16 }
  0x9b   :  { %v111_v23 = vpop.permute.xlu1 %110  ;;  %v107_v24 = vpop.permute.xlu0 %106 }
  0x9c   :  { %395 = vst.msk [vmem:[#allocation2 + $0x68] sm:$0xf] %vm368_vm0, %v460_v19  ;;  %396 = vst.msk [vmem:[#allocation2 + $0x6c] sm:$0xf] %vm368_vm0, %v461_v20  ;;  %v255_v25 = vmul.bf16 %v484_v17, %v111_v23  ;;  %v254_v26 = vmul.bf16 %v485_v18, %v107_v24 }
  0x9d   :  { %393 = vst.msk [vmem:[#allocation2 + $0x60] sm:$0xf] %vm368_vm0, %v458_v21  ;;  %394 = vst.msk [vmem:[#allocation2 + $0x64] sm:$0xf] %vm368_vm0, %v459_v22 }
  0x9e   :  { %v464_v27 = vcombine.low %v255_v25, %v255_v25  ;;  %v465_v28 = vcombine.high %v255_v25, %v255_v25  ;;  %v462_v29 = vcombine.low %v254_v26, %v254_v26  ;;  %v463_v30 = vcombine.high %v254_v26, %v254_v26 }
  0xa0   :  { %399 = vst.msk [vmem:[#allocation2 + $0x78] sm:$0xf] %vm368_vm0, %v464_v27  ;;  %400 = vst.msk [vmem:[#allocation2 + $0x7c] sm:$0xf] %vm368_vm0, %v465_v28 }
  0xa1   :  { %397 = vst.msk [vmem:[#allocation2 + $0x70] sm:$0xf] %vm368_vm0, %v462_v29  ;;  %398 = vst.msk [vmem:[#allocation2 + $0x74] sm:$0xf] %vm368_vm0, %v463_v30 }
  0xa2   :  { %497 = shalt.err (!%p494_p4)
}
  0xa3   :  { %s498_s17 = scalar_lea.hbm %s626_s2, 2048 }
  0xa4   :  { %p499_p5 = scmp.ne.s32.totalorder %s626_s2, %s498_s17  ;;  %p502_p6 = scmp.lt.u32.totalorder %s498_s17, %s626_s2 }
  0xa6   :  { %p504_p7 = pnand %p502_p6, %p499_p5 }
  0xa8   :  { %507 = shalt.err (!%p504_p7)
}
  0xa9   :  { %s512_s22 = smov 64   ;;  %s513_s23 = smov 4  }
  0xaa   :  { %412 = dma.vmem_to_hbm [thread:$0]  %s407_s14, 2048, %s626_s2, [#allocation3], %s512_s22, %s512_s22, %s513_s23  }
  0xab   :  { %508 = dma.done.wait [#allocation3], 2048  }
  0xac   :  { %509 = vsyncadd [#allocation3], 4294965248 }
  0xad   :  { %416 = vsyncpa [#allocation3], 1 }

</bundles_post_ra>
